<compile_context>
chip_gen: v7x
topology: tpu7x:2x2x1
jax: 0.10.0
libtpu: 0.0.40
codegen_flags: <defaults>
</compile_context>

<pallas_src>
import functools

import jax
import jax.numpy as jnp
from jax import lax
from jax.experimental import pallas as pl
from jax.experimental.pallas import tpu as pltpu

EPS = 1e-5


# --------------------------------------------------------------------------- #
# Kernel
# --------------------------------------------------------------------------- #
def _resblock_kernel(x_ref, bw0_ref, bw1_ref, bwd_ref, fold_ref, expand_ref,
                     g0_ref, b0_ref, g1_ref, b1_ref, out_ref, *, img_h, img_w):
    # x_ref      : (N*H, W*Cin)        input, lane-dense (w, c) layout
    # bw0_ref    : (3, W*Cin,  W*Cout) conv_0 block-banded tap matrices (dy-major)
    # bw1_ref    : (3, W*Cout, W*Cout) conv_1 block-banded tap matrices
    # bwd_ref    : (W*Cin, W*Cout)     1x1 downsample, block-diagonal
    # fold_ref   : (W*Cout, Cout)      folds (w,c) lanes -> per-channel sums
    # expand_ref : (Cout, W*Cout)      expands per-channel scale/shift -> lanes
    # g*/b*      : (1, Cout)           BN gamma / beta
    # out_ref    : (N*H, W*Cout)       lane-dense output (reshaped by wrapper)
    f32 = jnp.float32
    nh = x_ref.shape[0]
    m = nh * img_w                      # elements per channel for BN stats

    x = x_ref[...]                      # (NH, W*Cin), float32

    # Row index (mod H): masks the dy=0 / dy=2 halo taps so a row shift never
    # leaks across an image (h) or batch (n) boundary — in-kernel zero padding.
    h_idx = lax.broadcasted_iota(jnp.int32, (nh, 1), 0) % img_h

    def taps(v):
        """dy = 0/1/2 row-shifted, boundary-masked views of v (f32)."""
        up = jnp.where(h_idx > 0,
                       pltpu.roll(v, shift=1, axis=0), 0.0)          # reads row h-1
        dn = jnp.where(h_idx < img_h - 1,
                       pltpu.roll(v, shift=nh - 1, axis=0), 0.0)     # reads row h+1
        return (up, v, dn)

    def conv3x3(v, bw_ref):
        acc = jnp.zeros((nh, bw_ref.shape[-1]), f32)
        for dy, tap in enumerate(taps(v)):
            acc = acc + jnp.dot(tap.astype(bw_ref.dtype), bw_ref[dy],
                                preferred_element_type=f32)
        return acc

    def bn_relu(acc, g_ref, b_ref):
        # Single pass: per-channel sum / sum-of-squares, then fused scale/shift.
        rsum = jnp.sum(acc, axis=0, keepdims=True)                   # (1, W*C)
        rsumsq = jnp.sum(acc * acc, axis=0, keepdims=True)           # (1, W*C)
        sum_c = jnp.dot(rsum, fold_ref[...], preferred_element_type=f32)
        sumsq_c = jnp.dot(rsumsq, fold_ref[...], preferred_element_type=f32)
        mean = sum_c / m
        var = sumsq_c / m - mean * mean          # biased variance (train-mode BN)
        scale_c = g_ref[...] * lax.rsqrt(var + EPS)
        shift_c = b_ref[...] - mean * scale_c
        scale = jnp.dot(scale_c, expand_ref[...], preferred_element_type=f32)
        shift = jnp.dot(shift_c, expand_ref[...], preferred_element_type=f32)
        return jnp.maximum(acc * scale + shift, 0.0)

    # 1x1 downsample first: MXU work issued ahead of the VPU-bound BN blocks,
    # while x is hot in vregs.
    ds = jnp.dot(x.astype(bwd_ref.dtype), bwd_ref[...],
                 preferred_element_type=f32)                         # (NH, W*Cout)

    acc0 = conv3x3(x, bw0_ref)                                       # conv_0
    y0 = bn_relu(acc0, g0_ref, b0_ref)                               # bn_0 + act_0

    acc1 = conv3x3(y0, bw1_ref)                                      # conv_1
    y1 = bn_relu(acc1, g1_ref, b1_ref)                               # bn_1 + act_1

    out_ref[...] = jnp.maximum(y1 + ds, 0.0).astype(out_ref.dtype)   # residual+ReLU


# --------------------------------------------------------------------------- #
# Weight reformatting (trace-time glue, tiny)
# --------------------------------------------------------------------------- #
def _band_conv_weights(w_oihw, w_img):
    """PyTorch (Cout, Cin, 3, 3) -> (3, W*Cin, W*Cout) block-banded matrices.

    Tap dy's matrix folds the dx shift, W-direction zero padding and channel
    mixing into one lane-dense matmul operand."""
    c_out, c_in, kh, kw = w_oihw.shape
    wt = jnp.transpose(w_oihw, (2, 3, 1, 0))                # (3, 3, Cin, Cout)
    wi = jnp.arange(w_img)[:, None]                         # input column
    wo = jnp.arange(w_img)[None, :]                         # output column
    dx = wi - wo + 1                                        # (W, W)
    valid = ((dx >= 0) & (dx < kw)).astype(wt.dtype)
    gathered = wt[:, jnp.clip(dx, 0, kw - 1)]               # (3, W, W, Cin, Cout)
    gathered = gathered * valid[None, :, :, None, None]
    banded = jnp.transpose(gathered, (0, 1, 3, 2, 4))       # (3, Wi, Cin, Wo, Cout)
    return banded.reshape(kh, w_img * c_in, w_img * c_out)


def _band_1x1_weights(wd_oihw, w_img):
    """PyTorch (Cout, Cin, 1, 1) -> (W*Cin, W*Cout) block-diagonal matrix."""
    c_out, c_in = wd_oihw.shape[:2]
    wd_t = wd_oihw.reshape(c_out, c_in).T                   # (Cin, Cout)
    eye = jnp.eye(w_img, dtype=wd_t.dtype)
    big = eye[:, None, :, None] * wd_t[None, :, None, :]    # (Wi, Cin, Wo, Cout)
    return big.reshape(w_img * c_in, w_img * c_out)


# --------------------------------------------------------------------------- #
# Wrapper
# --------------------------------------------------------------------------- #
@functools.partial(jax.jit, static_argnames=("compute_dtype",))
def residual_block(x_nchw, w0, w1, wd, g0, b0, g1, b1,
                   *, compute_dtype=jnp.float32):
    """x_nchw: (N, Cin, H, W) f32; weights in PyTorch OIHW layout.

    compute_dtype: MXU operand dtype (use jnp.bfloat16 on v6e/v7x); conv
    accumulation and BN statistics stay float32."""
    n, c_in, h, w = x_nchw.shape
    c_out = w0.shape[0]

    # Layout glue: NCHW -> lane-dense (N*H, W*Cin).  No spatial jnp.pad — the
    # halo is handled inside the kernel with masked row shifts.
    x2d = jnp.transpose(x_nchw, (0, 2, 3, 1)).reshape(n * h, w * c_in)

    bw0 = _band_conv_weights(w0, w).astype(compute_dtype)   # (3, W*Cin,  W*Cout)
    bw1 = _band_conv_weights(w1, w).astype(compute_dtype)   # (3, W*Cout, W*Cout)
    bwd = _band_1x1_weights(wd, w).astype(compute_dtype)    # (W*Cin, W*Cout)
    fold = jnp.tile(jnp.eye(c_out, dtype=jnp.float32), (w, 1))   # (W*Cout, Cout)
    expand = fold.T                                              # (Cout, W*Cout)

    kernel = functools.partial(_resblock_kernel, img_h=h, img_w=w)
    vmem = pl.BlockSpec(memory_space=pltpu.MemorySpace.VMEM)

    out2d = pl.pallas_call(
        kernel,
        out_shape=jax.ShapeDtypeStruct((n * h, w * c_out), jnp.float32),
        in_specs=[vmem] * 10,
        out_specs=vmem,
        compiler_params=pltpu.CompilerParams(
            vmem_limit_bytes=32 * 1024 * 1024),
    )(x2d, bw0, bw1, bwd, fold, expand,
      g0.reshape(1, c_out), b0.reshape(1, c_out),
      g1.reshape(1, c_out), b1.reshape(1, c_out))

    # (N*H, W*Cout) -> (N, Cout, H, W)
    return jnp.transpose(out2d.reshape(n, h, w, c_out), (0, 3, 1, 2))


# --------------------------------------------------------------------------- #
# Pure-JAX reference (PyTorch train-mode forward semantics)
# --------------------------------------------------------------------------- #
def _reference(x_nchw, w0, w1, wd, g0, b0, g1, b1):
    x = jnp.transpose(x_nchw, (0, 2, 3, 1))
    dn = ('NHWC', 'HWIO', 'NHWC')

    def hwio(wt):
        return jnp.transpose(wt, (2, 3, 1, 0))

    def bn_relu(y, g, b):
        mean = jnp.mean(y, axis=(0, 1, 2), keepdims=True)
        var = jnp.mean((y - mean) ** 2, axis=(0, 1, 2), keepdims=True)
        return jnp.maximum((y - mean) * lax.rsqrt(var + EPS) * g + b, 0.0)

    y = lax.conv_general_dilated(x, hwio(w0), (1, 1), ((1, 1), (1, 1)),
                                 dimension_numbers=dn)
    y = bn_relu(y, g0.reshape(1, 1, 1, -1), b0.reshape(1, 1, 1, -1))
    y = lax.conv_general_dilated(y, hwio(w1), (1, 1), ((1, 1), (1, 1)),
                                 dimension_numbers=dn)
    y = bn_relu(y, g1.reshape(1, 1, 1, -1), b1.reshape(1, 1, 1, -1))
    ds = lax.conv_general_dilated(x, hwio(wd), (1, 1), ((0, 0), (0, 0)),
                                  dimension_numbers=dn)
    out = jnp.maximum(y + ds, 0.0)
    return jnp.transpose(out, (0, 3, 1, 2))


if __name__ == "__main__":
    N, Cin, Cout, H, W = 2, 4, 8, 16, 16

    key = jax.random.PRNGKey(0)
    kx, k0, k1, kd, kg0, kb0, kg1, kb1 = jax.random.split(key, 8)

    x = jax.random.normal(kx, (N, Cin, H, W), jnp.float32)
    # Conv weights in PyTorch OIHW layout; BN params per channel.
    w0 = 0.1 * jax.random.normal(k0, (Cout, Cin, 3, 3), jnp.float32)
    w1 = 0.1 * jax.random.normal(k1, (Cout, Cout, 3, 3), jnp.float32)
    wd = 0.1 * jax.random.normal(kd, (Cout, Cin, 1, 1), jnp.float32)
    g0 = 1.0 + 0.05 * jax.random.normal(kg0, (Cout,), jnp.float32)
    b0 = 0.05 * jax.random.normal(kb0, (Cout,), jnp.float32)
    g1 = 1.0 + 0.05 * jax.random.normal(kg1, (Cout,), jnp.float32)
    b1 = 0.05 * jax.random.normal(kb1, (Cout,), jnp.float32)

    ref = _reference(x, w0, w1, wd, g0, b0, g1, b1)

    # f32 MXU path — bit-faithful to the PyTorch forward.
    out = residual_block(x, w0, w1, wd, g0, b0, g1, b1)
    jax.block_until_ready(out)
    assert out.shape == (N, Cout, H, W)
    assert jnp.allclose(out, ref, rtol=1e-4, atol=1e-4), \
        f"f32 max abs err {jnp.max(jnp.abs(out - ref))}"

    # bf16 MXU-operand path (v6e/v7x optimization); f32 accumulation/BN stats.
    out_bf16 = residual_block(x, w0, w1, wd, g0, b0, g1, b1,
                              compute_dtype=jnp.bfloat16)
    jax.block_until_ready(out_bf16)
    assert jnp.allclose(out_bf16, ref, rtol=1e-1, atol=1e-1), \
        f"bf16 max abs err {jnp.max(jnp.abs(out_bf16 - ref))}"

    print("KERNEL_OK")
</pallas_src>

<mosaic_0001>
module attributes {stable_mosaic.version = 11 : i64} {
  func.func @_resblock_kernel(%arg0: memref<32x64xf32, #tpu.memory_space<vmem>>, %arg1: memref<3x64x128xf32, #tpu.memory_space<vmem>>, %arg2: memref<3x128x128xf32, #tpu.memory_space<vmem>>, %arg3: memref<64x128xf32, #tpu.memory_space<vmem>>, %arg4: memref<128x8xf32, #tpu.memory_space<vmem>>, %arg5: memref<8x128xf32, #tpu.memory_space<vmem>>, %arg6: memref<1x8xf32, #tpu.memory_space<vmem>>, %arg7: memref<1x8xf32, #tpu.memory_space<vmem>>, %arg8: memref<1x8xf32, #tpu.memory_space<vmem>>, %arg9: memref<1x8xf32, #tpu.memory_space<vmem>>, %arg10: memref<32x128xf32, #tpu.memory_space<vmem>>) attributes {dimension_semantics = [], scalar_prefetch = 0 : i64, scratch_operands = 0 : i64, tpu.core_type = #tpu.core_type<tc>} {
    %c0 = arith.constant 0 : index
    %c0_0 = arith.constant 0 : index
    %0 = vector.load %arg0[%c0, %c0_0] : memref<32x64xf32, #tpu.memory_space<vmem>>, vector<32x64xf32>
    %1 = tpu.iota {dimensions = array<i32: 0>} : vector<32x1xi32>
    %c16_i32 = arith.constant 16 : i32
    %c0_i32 = arith.constant 0 : i32
    %2 = arith.cmpi eq, %c16_i32, %c0_i32 : i32
    %c1_i32 = arith.constant 1 : i32
    %3 = arith.select %2, %c1_i32, %c16_i32 : i32
    %4 = vector.broadcast %3 : i32 to vector<32x1xi32>
    %5 = arith.remsi %1, %4 : vector<32x1xi32>
    %c0_i32_1 = arith.constant 0 : i32
    %6 = vector.broadcast %c0_i32_1 : i32 to vector<32x1xi32>
    %7 = arith.cmpi ne, %5, %6 : vector<32x1xi32>
    %c0_i32_2 = arith.constant 0 : i32
    %8 = vector.broadcast %c0_i32_2 : i32 to vector<32x1xi32>
    %9 = arith.cmpi slt, %5, %8 : vector<32x1xi32>
    %c0_i32_3 = arith.constant 0 : i32
    %10 = arith.cmpi slt, %3, %c0_i32_3 : i32
    %11 = vector.broadcast %10 : i1 to vector<32x1xi1>
    %12 = vector.broadcast %11 : vector<32x1xi1> to vector<32x1xi1>
    %13 = arith.xori %9, %12 : vector<32x1xi1>
    %14 = arith.andi %13, %7 : vector<32x1xi1>
    %15 = vector.broadcast %3 : i32 to vector<32x1xi32>
    %16 = arith.addi %5, %15 : vector<32x1xi32>
    %17 = arith.select %14, %16, %5 : vector<32x1xi1>, vector<32x1xi32>
    %c0_4 = arith.constant 0 : index
    %c0_5 = arith.constant 0 : index
    %18 = vector.load %arg3[%c0_4, %c0_5] : memref<64x128xf32, #tpu.memory_space<vmem>>, vector<64x128xf32>
    %cst = arith.constant dense<0.000000e+00> : vector<32x128xf32>
    %19 = tpu.matmul %0, %18, %cst {dimension_numbers = #tpu.dot_dimension_numbers<[1], [0], [0], [1], [0, 0, 1, 1], [], []>} : vector<32x64xf32>, vector<64x128xf32>, vector<32x128xf32> -> vector<32x128xf32>
    %cst_6 = arith.constant 0.000000e+00 : f32
    %20 = vector.broadcast %cst_6 : f32 to vector<32x128xf32>
    %c0_i32_7 = arith.constant 0 : i32
    %21 = vector.broadcast %c0_i32_7 : i32 to vector<32x1xi32>
    %22 = arith.cmpi sgt, %17, %21 : vector<32x1xi32>
    %c1_i32_8 = arith.constant 1 : i32
    %23 = tpu.dynamic_rotate %0 by %c1_i32_8 dim 0 : vector<32x64xf32>, i32 -> vector<32x64xf32>
    %cst_9 = arith.constant 0.000000e+00 : f32
    %24 = vector.shape_cast %22 : vector<32x1xi1> to vector<32x1xi1>
    %25 = vector.broadcast %24 : vector<32x1xi1> to vector<32x64xi1>
    %26 = vector.broadcast %cst_9 : f32 to vector<32x64xf32>
    %27 = arith.select %25, %23, %26 : vector<32x64xi1>, vector<32x64xf32>
    %c15_i32 = arith.constant 15 : i32
    %28 = vector.broadcast %c15_i32 : i32 to vector<32x1xi32>
    %29 = arith.cmpi slt, %17, %28 : vector<32x1xi32>
    %c31_i32 = arith.constant 31 : i32
    %30 = tpu.dynamic_rotate %0 by %c31_i32 dim 0 : vector<32x64xf32>, i32 -> vector<32x64xf32>
    %cst_10 = arith.constant 0.000000e+00 : f32
    %31 = vector.shape_cast %29 : vector<32x1xi1> to vector<32x1xi1>
    %32 = vector.broadcast %31 : vector<32x1xi1> to vector<32x64xi1>
    %33 = vector.broadcast %cst_10 : f32 to vector<32x64xf32>
    %34 = arith.select %32, %30, %33 : vector<32x64xi1>, vector<32x64xf32>
    %c0_11 = arith.constant 0 : index
    %c0_12 = arith.constant 0 : index
    %c0_13 = arith.constant 0 : index
    %35 = vector.load %arg1[%c0_11, %c0_12, %c0_13] : memref<3x64x128xf32, #tpu.memory_space<vmem>>, vector<1x64x128xf32>
    %36 = vector.shape_cast %35 : vector<1x64x128xf32> to vector<64x128xf32>
    %cst_14 = arith.constant dense<0.000000e+00> : vector<32x128xf32>
    %37 = tpu.matmul %27, %36, %cst_14 {dimension_numbers = #tpu.dot_dimension_numbers<[1], [0], [0], [1], [0, 0, 1, 1], [], []>} : vector<32x64xf32>, vector<64x128xf32>, vector<32x128xf32> -> vector<32x128xf32>
    %38 = arith.addf %20, %37 : vector<32x128xf32>
    %c1 = arith.constant 1 : index
    %c0_15 = arith.constant 0 : index
    %c0_16 = arith.constant 0 : index
    %39 = vector.load %arg1[%c1, %c0_15, %c0_16] : memref<3x64x128xf32, #tpu.memory_space<vmem>>, vector<1x64x128xf32>
    %40 = vector.shape_cast %39 : vector<1x64x128xf32> to vector<64x128xf32>
    %cst_17 = arith.constant dense<0.000000e+00> : vector<32x128xf32>
    %41 = tpu.matmul %0, %40, %cst_17 {dimension_numbers = #tpu.dot_dimension_numbers<[1], [0], [0], [1], [0, 0, 1, 1], [], []>} : vector<32x64xf32>, vector<64x128xf32>, vector<32x128xf32> -> vector<32x128xf32>
    %42 = arith.addf %38, %41 : vector<32x128xf32>
    %c2 = arith.constant 2 : index
    %c0_18 = arith.constant 0 : index
    %c0_19 = arith.constant 0 : index
    %43 = vector.load %arg1[%c2, %c0_18, %c0_19] : memref<3x64x128xf32, #tpu.memory_space<vmem>>, vector<1x64x128xf32>
    %44 = vector.shape_cast %43 : vector<1x64x128xf32> to vector<64x128xf32>
    %cst_20 = arith.constant dense<0.000000e+00> : vector<32x128xf32>
    %45 = tpu.matmul %34, %44, %cst_20 {dimension_numbers = #tpu.dot_dimension_numbers<[1], [0], [0], [1], [0, 0, 1, 1], [], []>} : vector<32x64xf32>, vector<64x128xf32>, vector<32x128xf32> -> vector<32x128xf32>
    %46 = arith.addf %42, %45 : vector<32x128xf32>
    %cst_21 = arith.constant dense<0.000000e+00> : vector<128xf32>
    %47 = vector.multi_reduction <add>, %46, %cst_21 [0] : vector<32x128xf32> to vector<128xf32>
    %48 = vector.shape_cast %47 : vector<128xf32> to vector<1x128xf32>
    %49 = arith.mulf %46, %46 : vector<32x128xf32>
    %cst_22 = arith.constant dense<0.000000e+00> : vector<128xf32>
    %50 = vector.multi_reduction <add>, %49, %cst_22 [0] : vector<32x128xf32> to vector<128xf32>
    %51 = vector.shape_cast %50 : vector<128xf32> to vector<1x128xf32>
    %c0_23 = arith.constant 0 : index
    %c0_24 = arith.constant 0 : index
    %52 = vector.load %arg4[%c0_23, %c0_24] : memref<128x8xf32, #tpu.memory_space<vmem>>, vector<128x8xf32>
    %cst_25 = arith.constant dense<0.000000e+00> : vector<1x8xf32>
    %53 = tpu.matmul %48, %52, %cst_25 {dimension_numbers = #tpu.dot_dimension_numbers<[1], [0], [0], [1], [0, 0, 1, 1], [], []>} : vector<1x128xf32>, vector<128x8xf32>, vector<1x8xf32> -> vector<1x8xf32>
    %c0_26 = arith.constant 0 : index
    %c0_27 = arith.constant 0 : index
    %54 = vector.load %arg4[%c0_26, %c0_27] : memref<128x8xf32, #tpu.memory_space<vmem>>, vector<128x8xf32>
    %cst_28 = arith.constant dense<0.000000e+00> : vector<1x8xf32>
    %55 = tpu.matmul %51, %54, %cst_28 {dimension_numbers = #tpu.dot_dimension_numbers<[1], [0], [0], [1], [0, 0, 1, 1], [], []>} : vector<1x128xf32>, vector<128x8xf32>, vector<1x8xf32> -> vector<1x8xf32>
    %cst_29 = arith.constant 5.120000e+02 : f32
    %56 = vector.broadcast %cst_29 : f32 to vector<1x8xf32>
    %57 = arith.divf %53, %56 : vector<1x8xf32>
    %cst_30 = arith.constant 5.120000e+02 : f32
    %58 = vector.broadcast %cst_30 : f32 to vector<1x8xf32>
    %59 = arith.divf %55, %58 : vector<1x8xf32>
    %60 = arith.mulf %57, %57 : vector<1x8xf32>
    %61 = arith.subf %59, %60 : vector<1x8xf32>
    %c0_31 = arith.constant 0 : index
    %c0_32 = arith.constant 0 : index
    %62 = vector.load %arg6[%c0_31, %c0_32] : memref<1x8xf32, #tpu.memory_space<vmem>>, vector<1x8xf32>
    %cst_33 = arith.constant 9.99999974E-6 : f32
    %63 = vector.broadcast %cst_33 : f32 to vector<1x8xf32>
    %64 = arith.addf %61, %63 : vector<1x8xf32>
    %65 = math.rsqrt %64 : vector<1x8xf32>
    %66 = arith.mulf %62, %65 : vector<1x8xf32>
    %c0_34 = arith.constant 0 : index
    %c0_35 = arith.constant 0 : index
    %67 = vector.load %arg7[%c0_34, %c0_35] : memref<1x8xf32, #tpu.memory_space<vmem>>, vector<1x8xf32>
    %68 = arith.mulf %57, %66 : vector<1x8xf32>
    %69 = arith.subf %67, %68 : vector<1x8xf32>
    %c0_36 = arith.constant 0 : index
    %c0_37 = arith.constant 0 : index
    %70 = vector.load %arg5[%c0_36, %c0_37] : memref<8x128xf32, #tpu.memory_space<vmem>>, vector<8x128xf32>
    %cst_38 = arith.constant dense<0.000000e+00> : vector<1x128xf32>
    %71 = tpu.matmul %66, %70, %cst_38 {dimension_numbers = #tpu.dot_dimension_numbers<[1], [0], [0], [1], [0, 0, 1, 1], [], []>} : vector<1x8xf32>, vector<8x128xf32>, vector<1x128xf32> -> vector<1x128xf32>
    %c0_39 = arith.constant 0 : index
    %c0_40 = arith.constant 0 : index
    %72 = vector.load %arg5[%c0_39, %c0_40] : memref<8x128xf32, #tpu.memory_space<vmem>>, vector<8x128xf32>
    %cst_41 = arith.constant dense<0.000000e+00> : vector<1x128xf32>
    %73 = tpu.matmul %69, %72, %cst_41 {dimension_numbers = #tpu.dot_dimension_numbers<[1], [0], [0], [1], [0, 0, 1, 1], [], []>} : vector<1x8xf32>, vector<8x128xf32>, vector<1x128xf32> -> vector<1x128xf32>
    %74 = vector.broadcast %71 : vector<1x128xf32> to vector<32x128xf32>
    %75 = arith.mulf %46, %74 : vector<32x128xf32>
    %76 = vector.broadcast %73 : vector<1x128xf32> to vector<32x128xf32>
    %77 = arith.addf %75, %76 : vector<32x128xf32>
    %cst_42 = arith.constant 0.000000e+00 : f32
    %78 = vector.broadcast %cst_42 : f32 to vector<32x128xf32>
    %79 = arith.maximumf %77, %78 : vector<32x128xf32>
    %cst_43 = arith.constant 0.000000e+00 : f32
    %80 = vector.broadcast %cst_43 : f32 to vector<32x128xf32>
    %c0_i32_44 = arith.constant 0 : i32
    %81 = vector.broadcast %c0_i32_44 : i32 to vector<32x1xi32>
    %82 = arith.cmpi sgt, %17, %81 : vector<32x1xi32>
    %c1_i32_45 = arith.constant 1 : i32
    %83 = tpu.dynamic_rotate %79 by %c1_i32_45 dim 0 : vector<32x128xf32>, i32 -> vector<32x128xf32>
    %cst_46 = arith.constant 0.000000e+00 : f32
    %84 = vector.shape_cast %82 : vector<32x1xi1> to vector<32x1xi1>
    %85 = vector.broadcast %84 : vector<32x1xi1> to vector<32x128xi1>
    %86 = vector.broadcast %cst_46 : f32 to vector<32x128xf32>
    %87 = arith.select %85, %83, %86 : vector<32x128xi1>, vector<32x128xf32>
    %c15_i32_47 = arith.constant 15 : i32
    %88 = vector.broadcast %c15_i32_47 : i32 to vector<32x1xi32>
    %89 = arith.cmpi slt, %17, %88 : vector<32x1xi32>
    %c31_i32_48 = arith.constant 31 : i32
    %90 = tpu.dynamic_rotate %79 by %c31_i32_48 dim 0 : vector<32x128xf32>, i32 -> vector<32x128xf32>
    %cst_49 = arith.constant 0.000000e+00 : f32
    %91 = vector.shape_cast %89 : vector<32x1xi1> to vector<32x1xi1>
    %92 = vector.broadcast %91 : vector<32x1xi1> to vector<32x128xi1>
    %93 = vector.broadcast %cst_49 : f32 to vector<32x128xf32>
    %94 = arith.select %92, %90, %93 : vector<32x128xi1>, vector<32x128xf32>
    %c0_50 = arith.constant 0 : index
    %c0_51 = arith.constant 0 : index
    %c0_52 = arith.constant 0 : index
    %95 = vector.load %arg2[%c0_50, %c0_51, %c0_52] : memref<3x128x128xf32, #tpu.memory_space<vmem>>, vector<1x128x128xf32>
    %96 = vector.shape_cast %95 : vector<1x128x128xf32> to vector<128x128xf32>
    %cst_53 = arith.constant dense<0.000000e+00> : vector<32x128xf32>
    %97 = tpu.matmul %87, %96, %cst_53 {dimension_numbers = #tpu.dot_dimension_numbers<[1], [0], [0], [1], [0, 0, 1, 1], [], []>} : vector<32x128xf32>, vector<128x128xf32>, vector<32x128xf32> -> vector<32x128xf32>
    %98 = arith.addf %80, %97 : vector<32x128xf32>
    %c1_54 = arith.constant 1 : index
    %c0_55 = arith.constant 0 : index
    %c0_56 = arith.constant 0 : index
    %99 = vector.load %arg2[%c1_54, %c0_55, %c0_56] : memref<3x128x128xf32, #tpu.memory_space<vmem>>, vector<1x128x128xf32>
    %100 = vector.shape_cast %99 : vector<1x128x128xf32> to vector<128x128xf32>
    %cst_57 = arith.constant dense<0.000000e+00> : vector<32x128xf32>
    %101 = tpu.matmul %79, %100, %cst_57 {dimension_numbers = #tpu.dot_dimension_numbers<[1], [0], [0], [1], [0, 0, 1, 1], [], []>} : vector<32x128xf32>, vector<128x128xf32>, vector<32x128xf32> -> vector<32x128xf32>
    %102 = arith.addf %98, %101 : vector<32x128xf32>
    %c2_58 = arith.constant 2 : index
    %c0_59 = arith.constant 0 : index
    %c0_60 = arith.constant 0 : index
    %103 = vector.load %arg2[%c2_58, %c0_59, %c0_60] : memref<3x128x128xf32, #tpu.memory_space<vmem>>, vector<1x128x128xf32>
    %104 = vector.shape_cast %103 : vector<1x128x128xf32> to vector<128x128xf32>
    %cst_61 = arith.constant dense<0.000000e+00> : vector<32x128xf32>
    %105 = tpu.matmul %94, %104, %cst_61 {dimension_numbers = #tpu.dot_dimension_numbers<[1], [0], [0], [1], [0, 0, 1, 1], [], []>} : vector<32x128xf32>, vector<128x128xf32>, vector<32x128xf32> -> vector<32x128xf32>
    %106 = arith.addf %102, %105 : vector<32x128xf32>
    %cst_62 = arith.constant dense<0.000000e+00> : vector<128xf32>
    %107 = vector.multi_reduction <add>, %106, %cst_62 [0] : vector<32x128xf32> to vector<128xf32>
    %108 = vector.shape_cast %107 : vector<128xf32> to vector<1x128xf32>
    %109 = arith.mulf %106, %106 : vector<32x128xf32>
    %cst_63 = arith.constant dense<0.000000e+00> : vector<128xf32>
    %110 = vector.multi_reduction <add>, %109, %cst_63 [0] : vector<32x128xf32> to vector<128xf32>
    %111 = vector.shape_cast %110 : vector<128xf32> to vector<1x128xf32>
    %c0_64 = arith.constant 0 : index
    %c0_65 = arith.constant 0 : index
    %112 = vector.load %arg4[%c0_64, %c0_65] : memref<128x8xf32, #tpu.memory_space<vmem>>, vector<128x8xf32>
    %cst_66 = arith.constant dense<0.000000e+00> : vector<1x8xf32>
    %113 = tpu.matmul %108, %112, %cst_66 {dimension_numbers = #tpu.dot_dimension_numbers<[1], [0], [0], [1], [0, 0, 1, 1], [], []>} : vector<1x128xf32>, vector<128x8xf32>, vector<1x8xf32> -> vector<1x8xf32>
    %c0_67 = arith.constant 0 : index
    %c0_68 = arith.constant 0 : index
    %114 = vector.load %arg4[%c0_67, %c0_68] : memref<128x8xf32, #tpu.memory_space<vmem>>, vector<128x8xf32>
    %cst_69 = arith.constant dense<0.000000e+00> : vector<1x8xf32>
    %115 = tpu.matmul %111, %114, %cst_69 {dimension_numbers = #tpu.dot_dimension_numbers<[1], [0], [0], [1], [0, 0, 1, 1], [], []>} : vector<1x128xf32>, vector<128x8xf32>, vector<1x8xf32> -> vector<1x8xf32>
    %cst_70 = arith.constant 5.120000e+02 : f32
    %116 = vector.broadcast %cst_70 : f32 to vector<1x8xf32>
    %117 = arith.divf %113, %116 : vector<1x8xf32>
    %cst_71 = arith.constant 5.120000e+02 : f32
    %118 = vector.broadcast %cst_71 : f32 to vector<1x8xf32>
    %119 = arith.divf %115, %118 : vector<1x8xf32>
    %120 = arith.mulf %117, %117 : vector<1x8xf32>
    %121 = arith.subf %119, %120 : vector<1x8xf32>
    %c0_72 = arith.constant 0 : index
    %c0_73 = arith.constant 0 : index
    %122 = vector.load %arg8[%c0_72, %c0_73] : memref<1x8xf32, #tpu.memory_space<vmem>>, vector<1x8xf32>
    %cst_74 = arith.constant 9.99999974E-6 : f32
    %123 = vector.broadcast %cst_74 : f32 to vector<1x8xf32>
    %124 = arith.addf %121, %123 : vector<1x8xf32>
    %125 = math.rsqrt %124 : vector<1x8xf32>
    %126 = arith.mulf %122, %125 : vector<1x8xf32>
    %c0_75 = arith.constant 0 : index
    %c0_76 = arith.constant 0 : index
    %127 = vector.load %arg9[%c0_75, %c0_76] : memref<1x8xf32, #tpu.memory_space<vmem>>, vector<1x8xf32>
    %128 = arith.mulf %117, %126 : vector<1x8xf32>
    %129 = arith.subf %127, %128 : vector<1x8xf32>
    %c0_77 = arith.constant 0 : index
    %c0_78 = arith.constant 0 : index
    %130 = vector.load %arg5[%c0_77, %c0_78] : memref<8x128xf32, #tpu.memory_space<vmem>>, vector<8x128xf32>
    %cst_79 = arith.constant dense<0.000000e+00> : vector<1x128xf32>
    %131 = tpu.matmul %126, %130, %cst_79 {dimension_numbers = #tpu.dot_dimension_numbers<[1], [0], [0], [1], [0, 0, 1, 1], [], []>} : vector<1x8xf32>, vector<8x128xf32>, vector<1x128xf32> -> vector<1x128xf32>
    %c0_80 = arith.constant 0 : index
    %c0_81 = arith.constant 0 : index
    %132 = vector.load %arg5[%c0_80, %c0_81] : memref<8x128xf32, #tpu.memory_space<vmem>>, vector<8x128xf32>
    %cst_82 = arith.constant dense<0.000000e+00> : vector<1x128xf32>
    %133 = tpu.matmul %129, %132, %cst_82 {dimension_numbers = #tpu.dot_dimension_numbers<[1], [0], [0], [1], [0, 0, 1, 1], [], []>} : vector<1x8xf32>, vector<8x128xf32>, vector<1x128xf32> -> vector<1x128xf32>
    %134 = vector.broadcast %131 : vector<1x128xf32> to vector<32x128xf32>
    %135 = arith.mulf %106, %134 : vector<32x128xf32>
    %136 = vector.broadcast %133 : vector<1x128xf32> to vector<32x128xf32>
    %137 = arith.addf %135, %136 : vector<32x128xf32>
    %cst_83 = arith.constant 0.000000e+00 : f32
    %138 = vector.broadcast %cst_83 : f32 to vector<32x128xf32>
    %139 = arith.maximumf %137, %138 : vector<32x128xf32>
    %140 = arith.addf %139, %19 : vector<32x128xf32>
    %cst_84 = arith.constant 0.000000e+00 : f32
    %141 = vector.broadcast %cst_84 : f32 to vector<32x128xf32>
    %142 = arith.maximumf %140, %141 : vector<32x128xf32>
    %c0_85 = arith.constant 0 : index
    %c0_86 = arith.constant 0 : index
    %143 = vector.load %arg10[%c0_85, %c0_86] : memref<32x128xf32, #tpu.memory_space<vmem>>, vector<32x128xf32>
    tpu.vector_store %arg10[%c0_85, %c0_86], %142 {strides = array<i32>} : memref<32x128xf32, #tpu.memory_space<vmem>>, vector<32x128xf32>,
    return
  }
}

</mosaic_0001>

<bundles_post_ra>
// kernel: tile.9
= control target key start
LH: loop header
LB: loop body
LE: loop exit
PB: predicated region body
PF: predicated region fallthrough
CT: control target
= control target key end

     0   :  { %vm6_vm0 = vcmask 1043458   ;;  %vm10_vm1 = vcmask 1045508   ;;  %vm14_vm2 = vcmask 1047558   ;;  %s19_s6 = smov 3  ;;  %s22_s7 = smov 12  ;;  %vm16_vm3 = vcmask 64512   ;;  %s736_s0 = inlined_call_operand.vmem [shape: f32[16,8,8], index: 0, kind: input, shape index: {}]   ;;  %s737_s1 = inlined_call_operand.vmem [shape: f32[128,8], index: 1, kind: output, shape index: {}]  }
   0x1   :  { %v348_v0 = vld [vmem:[%s736_s0 + $0xf] ss:$16 sm:%s19_s6]   ;;  %s27_s12 = smov 48  ;;  %s32_s13 = smov 192  ;;  %vm38_vm4 = vcmask 1048512   ;;  %vm60_vm5 = vcmask 982912  }
   0x2   :  { %v349_v1 = vld [vmem:[%s736_s0 + $0xf] ss:$16 sm:%s22_s7]   ;;  %s63_s18 = smov 3  ;;  %s66_s21 = smov 12  ;;  %vm82_vm6 = vcmask 917312   ;;  %vm104_vm7 = vcmask 851712  }
   0x3   :  { %v25_v2 = vsel %vm6_vm0, %v349_v1, %v348_v0  ;;  %v350_v3 = vld [vmem:[%s736_s0 + $0xf] ss:$16 sm:%s27_s12]   ;;  %v356_v6 = vld [vmem:[%s736_s0 + $0xd] ss:$16 sm:%s63_s18]   ;;  %s71_s22 = smov 48  ;;  %s76_s27 = smov 192 }
   0x4   :  { %v351_v4 = vld [vmem:[%s736_s0 + $0xf] ss:$16 sm:%s32_s13]   ;;  %v30_v5 = vsel %vm10_vm1, %v350_v3, %v25_v2  ;;  %v357_v8 = vld [vmem:[%s736_s0 + $0xd] ss:$16 sm:%s66_s21]   ;;  %s423_s28 = smov 120   ;;  %s41_s2 = smov 3 }
   0x5   :  { %v35_v7 = vsel %vm14_vm2, %v351_v4, %v30_v5  ;;  %v358_v9 = vld [vmem:[%s736_s0 + $0xd] ss:$16 sm:%s71_s22]   ;;  %v69_v10 = vsel %vm6_vm0, %v357_v8, %v356_v6  ;;  %s44_s3 = smov 12  ;;  %v352_v13 = vld [vmem:[%s736_s0 + $0xe] ss:$16 sm:%s41_s2]   ;;  %s49_s8 = smov 48 }
   0x6   :  { %36 = vrot.lane.b32.xlu0 %v35_v7, %s423_s28  ;;  %v359_v11 = vld [vmem:[%s736_s0 + $0xd] ss:$16 sm:%s76_s27]   ;;  %v74_v12 = vsel %vm10_vm1, %v358_v9, %v69_v10  ;;  %s54_s9 = smov 192  ;;  %s85_s14 = smov 3  ;;  %vm126_vm8 = vcmask 786112   ;;  %vm148_vm9 = vcmask 720512  }
   0x7   :  { %v353_v14 = vld [vmem:[%s736_s0 + $0xe] ss:$16 sm:%s44_s3]   ;;  %v79_v15 = vsel %vm14_vm2, %v359_v11, %v74_v12  ;;  %s424_s15 = smov 104   ;;  %v360_v20 = vld [vmem:[%s736_s0 + $0xc] ss:$16 sm:%s85_s14]   ;;  %s88_s18 = smov 12 }
   0x8   :  { %v47_v16 = vsel %vm6_vm0, %v353_v14, %v352_v13  ;;  %v354_v17 = vld [vmem:[%s736_s0 + $0xe] ss:$16 sm:%s49_s8]   ;;  %80 = vrot.lane.b32.xlu1 %v79_v15, %s424_s15  ;;  %s93_s19 = smov 48  ;;  %s98_s24 = smov 192  ;;  %vm170_vm10 = vcmask 654912   ;;  %vm192_vm11 = vcmask 589312  }
   0x9   :  { %v355_v18 = vld [vmem:[%s736_s0 + $0xe] ss:$16 sm:%s54_s9]   ;;  %v52_v19 = vsel %vm10_vm1, %v354_v17, %v47_v16  ;;  %v361_v22 = vld [vmem:[%s736_s0 + $0xc] ss:$16 sm:%s88_s18]   ;;  %s425_s25 = smov 112   ;;  %s107_s28 = smov 3 }
   0xa   :  { %v57_v21 = vsel %vm14_vm2, %v355_v18, %v52_v19  ;;  %v362_v23 = vld [vmem:[%s736_s0 + $0xc] ss:$16 sm:%s93_s19]   ;;  %v91_v24 = vsel %vm6_vm0, %v361_v22, %v360_v20  ;;  %s110_s29 = smov 12  ;;  %v364_v27 = vld [vmem:[%s736_s0 + $0xb] ss:$16 sm:%s107_s28]   ;;  %s115_s5 = smov 48 }
   0xb   :  { %58 = vrot.lane.b32.xlu0 %v57_v21, %s425_s25  ;;  %v363_v25 = vld [vmem:[%s736_s0 + $0xc] ss:$16 sm:%s98_s24]   ;;  %v96_v26 = vsel %vm10_vm1, %v362_v23, %v91_v24  ;;  %s120_s6 = smov 192  ;;  %s129_s11 = smov 3  ;;  %vm214_vm12 = vcmask 523712   ;;  %vm236_vm13 = vcmask 458112  }
   0xc   :  { %v365_v28 = vld [vmem:[%s736_s0 + $0xb] ss:$16 sm:%s110_s29]   ;;  %v101_v29 = vsel %vm14_vm2, %v363_v25, %v96_v26  ;;  %s426_s12 = smov 96   ;;  %v368_v34 = vld [vmem:[%s736_s0 + $0xa] ss:$16 sm:%s129_s11]   ;;  %s132_s15 = smov 12 }
   0xd   :  { %v113_v30 = vsel %vm6_vm0, %v365_v28, %v364_v27  ;;  %v366_v31 = vld [vmem:[%s736_s0 + $0xb] ss:$16 sm:%s115_s5]   ;;  %102 = vrot.lane.b32.xlu1 %v101_v29, %s426_s12  ;;  %s137_s16 = smov 48  ;;  %s142_s21 = smov 192  ;;  %vm258_vm14 = vcmask 392512   ;;  %vm280_vm15 = vcmask 326912  }
   0xe   :  { %v367_v32 = vld [vmem:[%s736_s0 + $0xb] ss:$16 sm:%s120_s6]   ;;  %v118_v33 = vsel %vm10_vm1, %v366_v31, %v113_v30  ;;  %v369_v36 = vld [vmem:[%s736_s0 + $0xa] ss:$16 sm:%s132_s15]   ;;  %s427_s22 = smov 88   ;;  %s151_s25 = smov 3 }
   0xf   :  { %v123_v35 = vsel %vm14_vm2, %v367_v32, %v118_v33  ;;  %v370_v37 = vld [vmem:[%s736_s0 + $0xa] ss:$16 sm:%s137_s16]   ;;  %v135_v38 = vsel %vm6_vm0, %v369_v36, %v368_v34  ;;  %s154_s26 = smov 12  ;;  %v372_v41 = vld [vmem:[%s736_s0 + $0x9] ss:$16 sm:%s151_s25]   ;;  %s159_s2 = smov 48 }
  0x10   :  { %124 = vrot.lane.b32.xlu0 %v123_v35, %s427_s22  ;;  %v371_v39 = vld [vmem:[%s736_s0 + $0xa] ss:$16 sm:%s142_s21]   ;;  %v140_v40 = vsel %vm10_vm1, %v370_v37, %v135_v38  ;;  %s164_s3 = smov 192  ;;  %s173_s8 = smov 3 }
  0x11   :  { %v373_v42 = vld [vmem:[%s736_s0 + $0x9] ss:$16 sm:%s154_s26]   ;;  %v145_v43 = vsel %vm14_vm2, %v371_v39, %v140_v40  ;;  %s428_s9 = smov 80   ;;  %v376_v48 = vld [vmem:[%s736_s0 + $0x8] ss:$16 sm:%s173_s8]   ;;  %s176_s12 = smov 12 }
  0x12   :  { %v157_v44 = vsel %vm6_vm0, %v373_v42, %v372_v41  ;;  %v374_v45 = vld [vmem:[%s736_s0 + $0x9] ss:$16 sm:%s159_s2]   ;;  %146 = vrot.lane.b32.xlu1 %v145_v43, %s428_s9  ;;  %s181_s13 = smov 48  ;;  %s186_s18 = smov 192 }
  0x13   :  { %v375_v46 = vld [vmem:[%s736_s0 + $0x9] ss:$16 sm:%s164_s3]   ;;  %v162_v47 = vsel %vm10_vm1, %v374_v45, %v157_v44  ;;  %v377_v50 = vld [vmem:[%s736_s0 + $0x8] ss:$16 sm:%s176_s12]   ;;  %s429_s19 = smov 72   ;;  %s195_s22 = smov 3 }
  0x14   :  { %v167_v49 = vsel %vm14_vm2, %v375_v46, %v162_v47  ;;  %v378_v51 = vld [vmem:[%s736_s0 + $0x8] ss:$16 sm:%s181_s13]   ;;  %v179_v52 = vsel %vm6_vm0, %v377_v50, %v376_v48  ;;  %s198_s23 = smov 12  ;;  %v380_v55 = vld [vmem:[%s736_s0 + $0x7] ss:$16 sm:%s195_s22]   ;;  %s203_s28 = smov 48 }
  0x15   :  { %168 = vrot.lane.b32.xlu0 %v167_v49, %s429_s19  ;;  %v379_v53 = vld [vmem:[%s736_s0 + $0x8] ss:$16 sm:%s186_s18]   ;;  %v184_v54 = vsel %vm10_vm1, %v378_v51, %v179_v52  ;;  %s208_s29 = smov 192  ;;  %s217_s5 = smov 3 }
  0x16   :  { %v381_v56 = vld [vmem:[%s736_s0 + $0x7] ss:$16 sm:%s198_s23]   ;;  %v189_v57 = vsel %vm14_vm2, %v379_v53, %v184_v54  ;;  %s430_s6 = smov 64   ;;  %v384_v62 = vld [vmem:[%s736_s0 + $0x6] ss:$16 sm:%s217_s5]   ;;  %s220_s9 = smov 12 }
  0x17   :  { %v201_v58 = vsel %vm6_vm0, %v381_v56, %v380_v55  ;;  %v382_v59 = vld [vmem:[%s736_s0 + $0x7] ss:$16 sm:%s203_s28]   ;;  %190 = vrot.lane.b32.xlu1 %v189_v57, %s430_s6  ;;  %s225_s10 = smov 48  ;;  %s230_s15 = smov 192 }
  0x18   :  { %v383_v60 = vld [vmem:[%s736_s0 + $0x7] ss:$16 sm:%s208_s29]   ;;  %v206_v61 = vsel %vm10_vm1, %v382_v59, %v201_v58  ;;  %v385_v0 = vld [vmem:[%s736_s0 + $0x6] ss:$16 sm:%s220_s9]   ;;  %s431_s16 = smov 56   ;;  %s239_s19 = smov 3 }
  0x19   :  { %v211_v63 = vsel %vm14_vm2, %v383_v60, %v206_v61  ;;  %v386_v1 = vld [vmem:[%s736_s0 + $0x6] ss:$16 sm:%s225_s10]   ;;  %v223_v2 = vsel %vm6_vm0, %v385_v0, %v384_v62  ;;  %s242_s20 = smov 12  ;;  %v388_v5 = vld [vmem:[%s736_s0 + $0x5] ss:$16 sm:%s239_s19]   ;;  %s247_s25 = smov 48 }
  0x1a   :  { %212 = vrot.lane.b32.xlu0 %v211_v63, %s431_s16  ;;  %v387_v3 = vld [vmem:[%s736_s0 + $0x6] ss:$16 sm:%s230_s15]   ;;  %v228_v4 = vsel %vm10_vm1, %v386_v1, %v223_v2  ;;  %s252_s26 = smov 192  ;;  %s261_s2 = smov 3 }
  0x1b   :  { %v389_v6 = vld [vmem:[%s736_s0 + $0x5] ss:$16 sm:%s242_s20]   ;;  %v233_v7 = vsel %vm14_vm2, %v387_v3, %v228_v4  ;;  %s432_s3 = smov 48   ;;  %v392_v12 = vld [vmem:[%s736_s0 + $0x4] ss:$16 sm:%s261_s2]   ;;  %s264_s6 = smov 12 }
  0x1c   :  { %v245_v8 = vsel %vm6_vm0, %v389_v6, %v388_v5  ;;  %v390_v9 = vld [vmem:[%s736_s0 + $0x5] ss:$16 sm:%s247_s25]   ;;  %234 = vrot.lane.b32.xlu1 %v233_v7, %s432_s3  ;;  %s269_s7 = smov 48  ;;  %s274_s12 = smov 192 }
  0x1d   :  { %v391_v10 = vld [vmem:[%s736_s0 + $0x5] ss:$16 sm:%s252_s26]   ;;  %v250_v11 = vsel %vm10_vm1, %v390_v9, %v245_v8  ;;  %v393_v14 = vld [vmem:[%s736_s0 + $0x4] ss:$16 sm:%s264_s6]   ;;  %s433_s13 = smov 40   ;;  %s283_s16 = smov 3 }
  0x1e   :  { %v255_v13 = vsel %vm14_vm2, %v391_v10, %v250_v11  ;;  %v394_v15 = vld [vmem:[%s736_s0 + $0x4] ss:$16 sm:%s269_s7]   ;;  %v267_v16 = vsel %vm6_vm0, %v393_v14, %v392_v12  ;;  %s286_s17 = smov 12  ;;  %v396_v19 = vld [vmem:[%s736_s0 + $0x3] ss:$16 sm:%s283_s16]   ;;  %s291_s22 = smov 48 }
  0x1f   :  { %256 = vrot.lane.b32.xlu0 %v255_v13, %s433_s13  ;;  %v395_v17 = vld [vmem:[%s736_s0 + $0x4] ss:$16 sm:%s274_s12]   ;;  %v272_v18 = vsel %vm10_vm1, %v394_v15, %v267_v16  ;;  %s296_s23 = smov 192  ;;  %s305_s28 = smov 3 }
  0x20   :  { %v397_v20 = vld [vmem:[%s736_s0 + $0x3] ss:$16 sm:%s286_s17]   ;;  %v277_v21 = vsel %vm14_vm2, %v395_v17, %v272_v18  ;;  %s434_s29 = smov 32   ;;  %v400_v26 = vld [vmem:[%s736_s0 + $0x2] ss:$16 sm:%s305_s28]   ;;  %s308_s3 = smov 12 }
  0x21   :  { %v289_v22 = vsel %vm6_vm0, %v397_v20, %v396_v19  ;;  %v398_v23 = vld [vmem:[%s736_s0 + $0x3] ss:$16 sm:%s291_s22]   ;;  %278 = vrot.lane.b32.xlu1 %v277_v21, %s434_s29  ;;  %s313_s4 = smov 48  ;;  %s318_s9 = smov 192 }
  0x22   :  { %v399_v24 = vld [vmem:[%s736_s0 + $0x3] ss:$16 sm:%s296_s23]   ;;  %v294_v25 = vsel %vm10_vm1, %v398_v23, %v289_v22  ;;  %v401_v28 = vld [vmem:[%s736_s0 + $0x2] ss:$16 sm:%s308_s3]   ;;  %s435_s10 = smov 24   ;;  %s327_s13 = smov 3 }
  0x23   :  { %v299_v27 = vsel %vm14_vm2, %v399_v24, %v294_v25  ;;  %v402_v29 = vld [vmem:[%s736_s0 + $0x2] ss:$16 sm:%s313_s4]   ;;  %v311_v30 = vsel %vm6_vm0, %v401_v28, %v400_v26  ;;  %s330_s14 = smov 12  ;;  %v404_v33 = vld [vmem:[%s736_s0 + $0x1] ss:$16 sm:%s327_s13]   ;;  %s335_s19 = smov 48 }
  0x24   :  { %300 = vrot.lane.b32.xlu0 %v299_v27, %s435_s10  ;;  %v403_v31 = vld [vmem:[%s736_s0 + $0x2] ss:$16 sm:%s318_s9]   ;;  %v316_v32 = vsel %vm10_vm1, %v402_v29, %v311_v30  ;;  %s340_s20 = smov 192  ;;  %s2_s25 = smov 3 }
  0x25   :  { %v405_v34 = vld [vmem:[%s736_s0 + $0x1] ss:$16 sm:%s330_s14]   ;;  %v321_v35 = vsel %vm14_vm2, %v403_v31, %v316_v32  ;;  %s436_s26 = smov 16   ;;  %s4_s27 = smov 12  ;;  %v3_v40 = vld [vmem:[%s736_s0] ss:$16 sm:%s2_s25]  }
  0x26   :  { %v333_v36 = vsel %vm6_vm0, %v405_v34, %v404_v33  ;;  %v406_v37 = vld [vmem:[%s736_s0 + $0x1] ss:$16 sm:%s335_s19]   ;;  %322 = vrot.lane.b32.xlu1 %v321_v35, %s436_s26  ;;  %s8_s28 = smov 48  ;;  %s12_s2 = smov 192 }
  0x27   :  { %v407_v38 = vld [vmem:[%s736_s0 + $0x1] ss:$16 sm:%s340_s20]   ;;  %v338_v39 = vsel %vm10_vm1, %v406_v37, %v333_v36  ;;  %v5_v42 = vld [vmem:[%s736_s0] ss:$16 sm:%s4_s27]   ;;  %s437_s7 = smov 8  }
  0x28   :  { %v343_v41 = vsel %vm14_vm2, %v407_v38, %v338_v39  ;;  %v9_v43 = vld [vmem:[%s736_s0] ss:$16 sm:%s8_s28]   ;;  %v7_v44 = vsel %vm6_vm0, %v5_v42, %v3_v40  ;;  %vm302_vm0 = vcmask 261312  }
  0x29   :  { %344 = vrot.lane.b32.xlu0 %v343_v41, %s437_s7  ;;  %v13_v45 = vld [vmem:[%s736_s0] ss:$16 sm:%s12_s2]   ;;  %v11_v46 = vsel %vm10_vm1, %v9_v43, %v7_v44  ;;  %vm324_vm1 = vcmask 195712  }
  0x2a   :  { %v15_v47 = vsel %vm14_vm2, %v13_v45, %v11_v46  ;;  %vm346_vm2 = vcmask 130112  }
  0x2b   :  { %17 = vst.msk [vmem:[%s737_s1] sm:$0xff] %vm16_vm3, %v15_v47  }
  0x78   :  { %v37_v48 = vpop.permute.xlu0 %36  }
  0x79   :  { %39 = vst.msk [vmem:[%s737_s1] sm:$0xff] %vm38_vm4, %v37_v48  }
  0x7a   :  { %v81_v49 = vpop.permute.xlu1 %80  }
  0x7d   :  { %v59_v50 = vpop.permute.xlu0 %58  }
  0x7e   :  { %61 = vst.msk [vmem:[%s737_s1] sm:$0xff] %vm60_vm5, %v59_v50  }
  0x7f   :  { %83 = vst.msk [vmem:[%s737_s1] sm:$0xff] %vm82_vm6, %v81_v49   ;;  %v103_v51 = vpop.permute.xlu1 %102  }
  0x80   :  { %105 = vst.msk [vmem:[%s737_s1] sm:$0xff] %vm104_vm7, %v103_v51  }
  0x82   :  { %v125_v52 = vpop.permute.xlu0 %124  }
  0x83   :  { %127 = vst.msk [vmem:[%s737_s1] sm:$0xff] %vm126_vm8, %v125_v52  }
  0x84   :  { %v147_v53 = vpop.permute.xlu1 %146  }
  0x85   :  { %149 = vst.msk [vmem:[%s737_s1] sm:$0xff] %vm148_vm9, %v147_v53  }
  0x87   :  { %v169_v54 = vpop.permute.xlu0 %168  }
  0x88   :  { %171 = vst.msk [vmem:[%s737_s1] sm:$0xff] %vm170_vm10, %v169_v54  }
  0x89   :  { %v191_v55 = vpop.permute.xlu1 %190  }
  0x8a   :  { %193 = vst.msk [vmem:[%s737_s1] sm:$0xff] %vm192_vm11, %v191_v55  }
  0x8c   :  { %v213_v56 = vpop.permute.xlu0 %212  }
  0x8d   :  { %215 = vst.msk [vmem:[%s737_s1] sm:$0xff] %vm214_vm12, %v213_v56  }
  0x8e   :  { %v235_v57 = vpop.permute.xlu1 %234  }
  0x8f   :  { %237 = vst.msk [vmem:[%s737_s1] sm:$0xff] %vm236_vm13, %v235_v57  }
  0x91   :  { %v257_v58 = vpop.permute.xlu0 %256  }
  0x92   :  { %259 = vst.msk [vmem:[%s737_s1] sm:$0xff] %vm258_vm14, %v257_v58  }
  0x93   :  { %v279_v59 = vpop.permute.xlu1 %278  }
  0x94   :  { %281 = vst.msk [vmem:[%s737_s1] sm:$0xff] %vm280_vm15, %v279_v59  }
  0x96   :  { %v301_v60 = vpop.permute.xlu0 %300  }
  0x97   :  { %303 = vst.msk [vmem:[%s737_s1] sm:$0xff] %vm302_vm0, %v301_v60  }
  0x98   :  { %v323_v61 = vpop.permute.xlu1 %322  }
  0x99   :  { %325 = vst.msk [vmem:[%s737_s1] sm:$0xff] %vm324_vm1, %v323_v61  }
  0x9b   :  { %v345_v62 = vpop.permute.xlu0 %344  }
  0x9c   :  { %347 = vst.msk [vmem:[%s737_s1] sm:$0xff] %vm346_vm2, %v345_v62  }

// kernel: residual_block.1
= control target key start
LH: loop header
LB: loop body
LE: loop exit
PB: predicated region body
PF: predicated region fallthrough
CT: control target
= control target key end

     0   :  { %vm100_vm0 = vcmask 523264   ;;  %v39_v12 = vlaneseq  ;;  %v2500_v57 = vmov 0.0|0.0   ;;  %vm2501_vm7 = vmmov 0   ;;  %s3191_s1 = inlined_call_operand.vmem [shape: f32[3,64,128], index: 1, kind: input, shape index: {}]   ;;  %s3192_s0 = inlined_call_operand.vmem [shape: f32[32,64], index: 0, kind: input, shape index: {}]   ;;  %s3193_s3 = inlined_call_operand.vmem [shape: f32[64,128], index: 3, kind: input, shape index: {}]   ;;  %s3194_s4 = inlined_call_operand.vmem [shape: f32[128,8], index: 4, kind: input, shape index: {}]   ;;  %s3195_s5 = inlined_call_operand.vmem [shape: f32[8,128], index: 5, kind: input, shape index: {}]   ;;  %s3196_s2 = inlined_call_operand.vmem [shape: f32[3,128,128], index: 2, kind: input, shape index: {}]   ;;  %s3197_s6 = inlined_call_operand.vmem [shape: f32[1,8], index: 6, kind: input, shape index: {}]   ;;  %s3198_s7 = inlined_call_operand.vmem [shape: f32[1,8], index: 7, kind: input, shape index: {}]   ;;  %s3199_s8 = inlined_call_operand.vmem [shape: f32[1,8], index: 8, kind: input, shape index: {}]   ;;  %s3200_s9 = inlined_call_operand.vmem [shape: f32[1,8], index: 9, kind: input, shape index: {}]   ;;  %s3201_s10 = inlined_call_operand.vmem [shape: f32[32,128], index: 10, kind: output, shape index: {}]  }
   0x1   :  { %v1607_v0 = vld [vmem:[%s3191_s1 + $0x40] sm:$0xff]  ;;  %v1608_v1 = vld [vmem:[%s3191_s1 + $0x48] sm:$0xff]  ;;  %v1609_v2 = vld [vmem:[%s3191_s1 + $0x50] sm:$0xff]  ;;  %vm748_vm8 = vcmask 64512  }
   0x2   :  { %v2237_v3 = vpack.c.bf16 %v1608_v1, %v1607_v0  ;;  %v1610_v4 = vld [vmem:[%s3191_s1 + $0x58] sm:$0xff]  ;;  %v1611_v6 = vld [vmem:[%s3191_s1 + $0x60] sm:$0xff]  ;;  %v1612_v7 = vld [vmem:[%s3191_s1 + $0x68] sm:$0xff]  ;;  %v2603_v18 = vshrl.u32 %v39_v12, 7 }
   0x3   :  { %v2241_v5 = vpack.c.bf16 %v1610_v4, %v1609_v2  ;;  %v2579_v8 = vld [vmem:[%s3192_s0] sm:$0xff]  ;;  %v2245_v9 = vpack.c.bf16 %v1612_v7, %v1611_v6  ;;  %v1613_v10 = vld [vmem:[%s3191_s1 + $0x70] sm:$0xff]  ;;  %v1614_v11 = vld [vmem:[%s3191_s1 + $0x78] sm:$0xff] }
   0x4   :  { %2238 = vmatprep.subr.bf16.mxu1 %v2237_v3  ;;  %1897 = vmatprep.mubr.msk.f32.mxu1 %vm100_vm0, %v2579_v8  ;;  %v2249_v13 = vpack.c.bf16 %v1614_v11, %v1613_v10  ;;  %v248_v14 = vld [vmem:[%s3191_s1] sm:$0xff]  ;;  %v93_v16 = vld [vmem:[%s3193_s3 + $0x8] sm:$0xff]  ;;  %v94_v19 = vld [vmem:[%s3193_s3 + $0x10] sm:$0xff]  ;;  %v202_v26 = vrot.slane %v2579_v8, 7  ;;  %v48_v29 = vand.u32 15, %v2603_v18  ;;  %vm206_vm1 = vcmp.lt.s32.totalorder %v2603_v18, 1 }
   0x5   :  { %2240 = vmatpush3.bf16.msra.mxu1 %v2237_v3  ;;  %1875 = vmatprep.mubr.msk.f32.mxu0 %vm100_vm0, %v2579_v8  ;;  %v92_v15 = vld [vmem:[%s3193_s3] sm:$0xff]  ;;  %v249_v17 = vld [vmem:[%s3191_s1 + $0x8] sm:$0xff]  ;;  %v95_v20 = vld [vmem:[%s3193_s3 + $0x18] sm:$0xff]  ;;  %v42_v47 = vadd.s32 16, %v2603_v18  ;;  %vm231_vm4 = vcmp.lt.s32.totalorder %v2603_v18, 7 }
   0x6   :  { %2242 = vmatprep.subr.bf16.mxu1 %v2241_v5  ;;  %v2614_v21 = vld [vmem:[%s3192_s0 + $0x18] sm:$0xff]  ;;  %v2221_v22 = vpack.c.bf16 %v93_v16, %v92_v15  ;;  %v2225_v23 = vpack.c.bf16 %v95_v20, %v94_v19  ;;  %v2253_v24 = vpack.c.bf16 %v249_v17, %v248_v14  ;;  %v250_v25 = vld [vmem:[%s3191_s1 + $0x10] sm:$0xff]  ;;  %v96_v30 = vld [vmem:[%s3193_s3 + $0x20] sm:$0xff]  ;;  %vm2648_vm2 = vcmp.gt.s32.totalorder %v48_v29, 0 }
   0x7   :  { %v251_v27 = vld [vmem:[%s3191_s1 + $0x18] sm:$0xff]  ;;  %v205_v28 = vrot.slane %v2614_v21, 7  ;;  %v97_v31 = vld [vmem:[%s3193_s3 + $0x28] sm:$0xff]  ;;  %v252_v34 = vld [vmem:[%s3191_s1 + $0x20] sm:$0xff]  ;;  %v62_v54 = vand.u32 15, %v42_v47  ;;  %v41_v15 = vadd.s32 8, %v2603_v18 }
   0x8   :  { %2222 = vmatprep.subr.bf16.mxu0 %v2221_v22  ;;  %v2635_v32 = vld [vmem:[%s3192_s0 + $0x8] sm:$0xff]  ;;  %v2257_v33 = vpack.c.bf16 %v251_v27, %v250_v25  ;;  %v2643_v35 = vld [vmem:[%s3192_s0 + $0x10] sm:$0xff]  ;;  %v2229_v36 = vpack.c.bf16 %v97_v31, %v96_v30  ;;  %v99_v41 = vld [vmem:[%s3193_s3 + $0x38] sm:$0xff] }
   0x9   :  { %2244 = vmatpush3.bf16.msra.mxu1 %v2241_v5  ;;  %2224 = vmatpush3.bf16.msra.mxu0 %v2221_v22  ;;  %v253_v37 = vld [vmem:[%s3191_s1 + $0x28] sm:$0xff]  ;;  %v210_v39 = vsel %vm206_vm1, %v205_v28, %v202_v26  ;;  %v98_v40 = vld [vmem:[%s3193_s3 + $0x30] sm:$0xff]  ;;  %v255_v46 = vld [vmem:[%s3191_s1 + $0x38] sm:$0xff]  ;;  %v204_v51 = vrot.slane %v2643_v35, 7  ;;  %v203_v56 = vrot.slane %v2635_v32, 7  ;;  %vm2709_vm3 = vcmp.gt.s32.totalorder %v62_v54, 0 }
   0xa   :  { %2246 = vmatprep.subr.bf16.mxu1 %v2245_v9  ;;  %2226 = vmatprep.subr.bf16.mxu0 %v2225_v23  ;;  %v2261_v42 = vpack.c.bf16 %v253_v37, %v252_v34  ;;  %v219_v43 = vsel %vm2648_vm2, %v210_v39, 0.0  ;;  %v2233_v44 = vpack.c.bf16 %v99_v41, %v98_v40  ;;  %v254_v45 = vld [vmem:[%s3191_s1 + $0x30] sm:$0xff]  ;;  %v579_v48 = vld [vmem:[%s3194_s4] sm:$0xff]  ;;  %v580_v49 = vld [vmem:[%s3194_s4 + $0x8] sm:$0xff]  ;;  %v227_v5 = vrot.slane %v2579_v8, 1 }
   0xb   :  { %v2265_v50 = vpack.c.bf16 %v255_v46, %v254_v45  ;;  %v1623_v52 = vld [vmem:[%s3191_s1 + $0x80] sm:$0xff]  ;;  %v1624_v53 = vld [vmem:[%s3191_s1 + $0x88] sm:$0xff]  ;;  %v2693_v55 = vpack.c.bf16 %v580_v49, %v579_v48  ;;  %v581_v58 = vld [vmem:[%s3194_s4 + $0x10] sm:$0xff]  ;;  %v208_v0 = vsel %vm206_vm1, %v203_v56, %v204_v51  ;;  %v209_v2 = vsel %vm206_vm1, %v202_v26, %v203_v56 }
   0xc   :  { %v582_v59 = vld [vmem:[%s3194_s4 + $0x18] sm:$0xff]  ;;  %v2269_v60 = vpack.c.bf16 %v1624_v53, %v1623_v52  ;;  %v1625_v61 = vld [vmem:[%s3191_s1 + $0x90] sm:$0xff]  ;;  %v583_v3 = vld [vmem:[%s3194_s4 + $0x20] sm:$0xff]  ;;  %v228_v6 = vrot.slane %v2635_v32, 1  ;;  %v207_v12 = vsel %vm206_vm1, %v204_v51, %v205_v28  ;;  %v229_v19 = vrot.slane %v2643_v35, 1 }
   0xd   :  { %2248 = vmatpush3.bf16.msra.mxu1 %v2245_v9  ;;  %2228 = vmatpush3.bf16.msra.mxu0 %v2225_v23  ;;  %v1626_v62 = vld [vmem:[%s3191_s1 + $0x98] sm:$0xff]  ;;  %v2718_v1 = vpack.c.bf16 %v582_v59, %v581_v58  ;;  %v584_v4 = vld [vmem:[%s3194_s4 + $0x28] sm:$0xff]  ;;  %v221_v9 = vsel %vm2709_vm3, %v208_v0, 0.0  ;;  %v1627_v10 = vld [vmem:[%s3191_s1 + $0xa0] sm:$0xff]  ;;  %v55_v22 = vand.u32 15, %v41_v15  ;;  %v43_v23 = vadd.s32 24, %v2603_v18 }
   0xe   :  { %2250 = vmatprep.subr.bf16.mxu1 %v2249_v13  ;;  %2230 = vmatprep.subr.bf16.mxu0 %v2229_v36  ;;  %v2273_v7 = vpack.c.bf16 %v1626_v62, %v1625_v61  ;;  %v1628_v11 = vld [vmem:[%s3191_s1 + $0xa8] sm:$0xff]  ;;  %v2748_v8 = vpack.c.bf16 %v584_v4, %v583_v3  ;;  %v234_v14 = vsel %vm231_vm4, %v227_v5, %v228_v6  ;;  %v1629_v16 = vld [vmem:[%s3191_s1 + $0xb0] sm:$0xff]  ;;  %v1630_v17 = vld [vmem:[%s3191_s1 + $0xb8] sm:$0xff]  ;;  %v2502_v48 = vmov 0.0  }
   0xf   :  { %v2281_v20 = vpack.c.bf16 %v1630_v17, %v1629_v16  ;;  %vm2772_vm5 = vcmp.lt.s32.totalorder %v55_v22, 15  ;;  %v233_v26 = vsel %vm231_vm4, %v228_v6, %v229_v19  ;;  %v69_v27 = vand.u32 15, %v43_v23  ;;  %v589_v39 = vld [vmem:[%s3194_s4 + $0x50] sm:$0xff]  ;;  %v590_v40 = vld [vmem:[%s3194_s4 + $0x58] sm:$0xff]  ;;  %v2899_v22 = vld [vmem:[%s3195_s5] sm:$0xff] }
  0x10   :  { %v245_v28 = vsel %vm2772_vm5, %v233_v26, 0.0  ;;  %v2819_v41 = vpack.c.bf16 %v590_v40, %v589_v39  ;;  %v593_v45 = vld [vmem:[%s3194_s4 + $0x70] sm:$0xff]  ;;  %v594_v46 = vld [vmem:[%s3194_s4 + $0x78] sm:$0xff]  ;;  %v1637_v23 = vld [vmem:[%s3196_s2 + $0x80] sm:$0xff] }
  0x11   :  { %2252 = vmatpush3.bf16.msra.mxu1 %v2249_v13  ;;  %2232 = vmatpush3.bf16.msra.mxu0 %v2229_v36  ;;  %v2277_v13 = vpack.c.bf16 %v1628_v11, %v1627_v10  ;;  %vm2782_vm6 = vcmp.lt.s32.totalorder %v69_v27, 15  ;;  %v588_v36 = vld [vmem:[%s3194_s4 + $0x48] sm:$0xff]  ;;  %v2839_v47 = vpack.c.bf16 %v594_v46, %v593_v45  ;;  %v740_v39 = vld [vmem:[%s3197_s6] sm:$0x1]  ;;  %v1639_v45 = vld [vmem:[%s3196_s2 + $0x90] sm:$0xff] }
  0x12   :  { %2254 = vmatprep.subr.bf16.mxu1 %v2253_v24  ;;  %2234 = vmatprep.subr.bf16.mxu0 %v2233_v44  ;;  %v1640_v46 = vld [vmem:[%s3196_s2 + $0x98] sm:$0xff]  ;;  %v1663_v63 = vld [vmem:[%s3196_s2 + $0x140] sm:$0xff] }
  0x13   :  { %v950_v38 = vld [vmem:[%s3196_s2 + $0x58] sm:$0xff] }
  0x14   :  { %1898 = vmatmul.mubr.msk.f32.vlgmr.msra.gmra.mrb[0].mxu1 %vm100_vm0, %v2635_v32 }
  0x15   :  { %2256 = vmatpush3.bf16.msra.mxu1 %v2253_v24  ;;  %1900 = vmatprep.mubr.msk.f32.mxu1 %vm100_vm0, %v2643_v35  ;;  %v230_v24 = vrot.slane %v2614_v21, 1 }
  0x16   :  { %2258 = vmatprep.subr.bf16.mxu1 %v2257_v33  ;;  %2236 = vmatpush3.bf16.msra.mxu0 %v2233_v44 }
  0x17   :  { %2285 = vmatprep.subr.bf16.mxu0 %v2500_v57  ;;  %v232_v29 = vsel %vm231_vm4, %v229_v19, %v230_v24 }
  0x18   :  { %1901 = vmatmul.mubr.msk.f32.gmra.mrb[2].mxu1 %vm100_vm0, %v2614_v21 }
  0x19   :  { %2260 = vmatpush3.bf16.msra.mxu1 %v2257_v33  ;;  %1919 = vmatprep.mubr.msk.f32.mxu1 %vm100_vm0, %v219_v43  ;;  %v586_v33 = vld [vmem:[%s3194_s4 + $0x38] sm:$0xff]  ;;  %v592_v43 = vld [vmem:[%s3194_s4 + $0x68] sm:$0xff] }
  0x1a   :  { %2262 = vmatprep.subr.bf16.mxu1 %v2261_v42  ;;  %1876 = vmatmul.mubr.msk.f32.vlgmr.msra.gmra.mrb[0].mxu0 %vm100_vm0, %v2635_v32  ;;  %v585_v32 = vld [vmem:[%s3194_s4 + $0x30] sm:$0xff] }
  0x1b   :  { %2287 = vmatpush3.bf16.msra.mxu0 %v2693_v55  ;;  %1878 = vmatprep.mubr.msk.f32.mxu0 %vm100_vm0, %v2643_v35  ;;  %v2799_v34 = vpack.c.bf16 %v586_v33, %v585_v32  ;;  %v587_v35 = vld [vmem:[%s3194_s4 + $0x40] sm:$0xff] }
  0x1c   :  { %2288 = vmatprep.subr.bf16.mxu0 %v2500_v57  ;;  %v2809_v37 = vpack.c.bf16 %v588_v36, %v587_v35 }
  0x1d   :  { %2264 = vmatpush3.bf16.msra.mxu1 %v2261_v42  ;;  %v591_v42 = vld [vmem:[%s3194_s4 + $0x60] sm:$0xff] }
  0x1e   :  { %2266 = vmatprep.subr.bf16.mxu1 %v2265_v50  ;;  %1879 = vmatmul.mubr.msk.f32.gmra.mrb[2].mxu0 %vm100_vm0, %v2614_v21  ;;  %v235_v21 = vsel %vm231_vm4, %v230_v24, %v227_v5  ;;  %v2829_v44 = vpack.c.bf16 %v592_v43, %v591_v42  ;;  %v1638_v24 = vld [vmem:[%s3196_s2 + $0x88] sm:$0xff]  ;;  %v744_v43 = vld [vmem:[%s3198_s7] sm:$0x1] }
  0x1f   :  { %2290 = vmatpush3.bf16.msra.mxu0 %v2718_v1  ;;  %v247_v31 = vsel %vm2782_vm6, %v235_v21, 0.0  ;;  %1979 = vmatprep.mubr.msk.f32.mxu0 %vm2501_vm7, %v2502_v48  ;;  %v2333_v26 = vpack.c.bf16 %v1638_v24, %v1637_v23  ;;  %v940_v23 = vld [vmem:[%s3196_s2 + $0x8] sm:$0xff] }
  0x20   :  { %2291 = vmatprep.subr.bf16.mxu0 %v2500_v57 }
  0x21   :  { %2268 = vmatpush3.bf16.msra.mxu1 %v2265_v50 }
  0x22   :  { %2270 = vmatprep.subr.bf16.mxu1 %v2269_v60 }
  0x23   :  { %2293 = vmatpush3.bf16.msra.mxu0 %v2748_v8 }
  0x24   :  { %1920 = vmatmul.mubr.msk.f32.vlgmr.msra.gmra.mrb[0].mxu1 %vm100_vm0, %v209_v2  ;;  %2294 = vmatprep.subr.bf16.mxu0 %v2500_v57 }
  0x25   :  { %2272 = vmatpush3.bf16.msra.mxu1 %v2269_v60  ;;  %1922 = vmatprep.mubr.msk.f32.mxu1 %vm100_vm0, %v221_v9 }
  0x26   :  { %2274 = vmatprep.subr.bf16.mxu1 %v2273_v7 }
  0x27   :  { %2296 = vmatpush3.bf16.msra.mxu0 %v2799_v34 }
  0x28   :  { %1923 = vmatmul.mubr.msk.f32.gmra.mrb[2].mxu1 %vm100_vm0, %v207_v12  ;;  %2297 = vmatprep.subr.bf16.mxu0 %v2500_v57 }
  0x29   :  { %2276 = vmatpush3.bf16.msra.mxu1 %v2273_v7  ;;  %1941 = vmatprep.mubr.msk.f32.mxu1 %vm100_vm0, %v234_v14 }
  0x2a   :  { %2278 = vmatprep.subr.bf16.mxu1 %v2277_v13 }
  0x2b   :  { %2299 = vmatpush3.bf16.msra.mxu0 %v2809_v37 }
  0x2c   :  { %2300 = vmatprep.subr.bf16.mxu0 %v2500_v57 }
  0x2d   :  { %2280 = vmatpush3.bf16.msra.mxu1 %v2277_v13 }
  0x2e   :  { %2282 = vmatprep.subr.bf16.mxu1 %v2281_v20 }
  0x2f   :  { %2302 = vmatpush3.bf16.msra.mxu0 %v2819_v41 }
  0x30   :  { %2303 = vmatprep.subr.bf16.mxu0 %v2500_v57 }
  0x31   :  { %2284 = vmatpush3.bf16.msra.mxu1 %v2281_v20 }
  0x32   :  { %2022 = vmatprep.subr.mxu1 %v2502_v48 }
  0x33   :  { %2305 = vmatpush3.bf16.msra.mxu0 %v2829_v44 }
  0x34   :  { %1942 = vmatmul.mubr.msk.f32.vlgmr.msra.gmra.mrb[0].mxu1 %vm100_vm0, %v245_v28  ;;  %2306 = vmatprep.subr.bf16.mxu0 %v2500_v57 }
  0x35   :  { %1944 = vmatprep.mubr.msk.f32.mxu1 %vm100_vm0, %v232_v29  ;;  %2023 = vmatpush3.msra.mxu1 %v2899_v22 }
  0x36   :  { %2334 = vmatprep.subr.bf16.mxu1 %v2333_v26 }
  0x37   :  { %2308 = vmatpush3.bf16.msra.mxu0 %v2839_v47 }
  0x38   :  { %1945 = vmatmul.mubr.msk.f32.gmra.mrb[2].mxu1 %vm100_vm0, %v247_v31  ;;  %2309 = vmatprep.subr.bf16.mxu0 %v2500_v57 }
  0x39   :  { %2024 = vmatprep.mubr.msk.f32.mxu1 %vm2501_vm7, %v2502_v48 }
  0xed   :  { %v2848_v49 = vpop.f32.mrb[0].mxu0 }
  0xee   :  { %v2850_v50 = vpop.f32.mrb[1].mxu0 }
  0xf1   :  { %v2852_v51 = vpop.f32.mrb[2].mxu0 }
  0xf2   :  { %v2854_v52 = vpop.f32.mrb[3].mxu0 }
 0x107   :  { %v2856_v53 = vpop.f32.mrb[0].mxu1 }
 0x108   :  { %v567_v54 = vmul.f32 %v2856_v53, %v2856_v53  ;;  %v2860_v56 = vpop.f32.mrb[1].mxu1 }
 0x109   :  { %v557_v58 = vadd.f32 %v2856_v53, %v2860_v56  ;;  %v566_v59 = vmul.f32 %v2860_v56, %v2860_v56 }
 0x10b   :  { %v570_v60 = vadd.f32 %v567_v54, %v566_v59  ;;  %v2866_v61 = vpop.f32.mrb[2].mxu1  ;;  %v2337_v59 = vpack.c.bf16 %v1640_v46, %v1639_v45  ;;  %v941_v45 = vld [vmem:[%s3196_s2 + $0x10] sm:$0xff] }
 0x10c   :  { %v2868_v62 = vpop.f32.mrb[3].mxu1  ;;  %v569_v3 = vmul.f32 %v2866_v61, %v2866_v61 }
 0x10d   :  { %v558_v0 = vadd.f32 %v557_v58, %v2868_v62  ;;  %v568_v2 = vmul.f32 %v2868_v62, %v2868_v62 }
 0x10f   :  { %v559_v4 = vadd.f32 %v2866_v61, %v558_v0  ;;  %v571_v5 = vadd.f32 %v570_v60, %v568_v2  ;;  %v1641_v60 = vld [vmem:[%s3196_s2 + $0xa0] sm:$0xff]  ;;  %v1642_v0 = vld [vmem:[%s3196_s2 + $0xa8] sm:$0xff] }
 0x110   :  { %v2341_v2 = vpack.c.bf16 %v1642_v0, %v1641_v60  ;;  %v944_v60 = vld [vmem:[%s3196_s2 + $0x28] sm:$0xff] }
 0x111   :  { %v560_v6 = vrot.slane %v559_v4, 4  ;;  %v572_v7 = vadd.f32 %v571_v5, %v569_v3  ;;  %v1643_v3 = vld [vmem:[%s3196_s2 + $0xb0] sm:$0xff] }
 0x113   :  { %v561_v9 = vadd.f32 %v560_v6, %v559_v4  ;;  %v573_v14 = vrot.slane %v572_v7, 4  ;;  %v1644_v4 = vld [vmem:[%s3196_s2 + $0xb8] sm:$0xff]  ;;  %v1645_v6 = vld [vmem:[%s3196_s2 + $0xc0] sm:$0xff] }
 0x114   :  { %v2345_v5 = vpack.c.bf16 %v1644_v4, %v1643_v3 }
 0x115   :  { %v562_v10 = vrot.slane %v561_v9, 2  ;;  %v574_v15 = vadd.f32 %v573_v14, %v572_v7  ;;  %v1646_v7 = vld [vmem:[%s3196_s2 + $0xc8] sm:$0xff] }
 0x116   :  { %v1650_v14 = vld [vmem:[%s3196_s2 + $0xe8] sm:$0xff] }
 0x117   :  { %v563_v11 = vadd.f32 %v562_v10, %v561_v9  ;;  %v575_v16 = vrot.slane %v574_v15, 2  ;;  %v2349_v9 = vpack.c.bf16 %v1646_v7, %v1645_v6  ;;  %v1647_v10 = vld [vmem:[%s3196_s2 + $0xd0] sm:$0xff] }
 0x119   :  { %v564_v12 = vrot.slane %v563_v11, 1  ;;  %v576_v17 = vadd.f32 %v575_v16, %v574_v15  ;;  %v1651_v16 = vld [vmem:[%s3196_s2 + $0xf0] sm:$0xff] }
 0x11b   :  { %v565_v13 = vadd.f32 %v564_v12, %v563_v11  ;;  %v577_v19 = vrot.slane %v576_v17, 1  ;;  %v1648_v11 = vld [vmem:[%s3196_s2 + $0xd8] sm:$0xff] }
 0x11c   :  { %v2353_v12 = vpack.c.bf16 %v1648_v11, %v1647_v10 }
 0x11d   :  { %1980 = vmatmul.mubr.f32.vlgmr.msra.gmra.mrb[4].mxu0 %v565_v13  ;;  %v578_v20 = vadd.f32 %v577_v19, %v576_v17  ;;  %v1649_v13 = vld [vmem:[%s3196_s2 + $0xe0] sm:$0xff]  ;;  %v1652_v17 = vld [vmem:[%s3196_s2 + $0xf8] sm:$0xff] }
 0x11e   :  { %2311 = vmatpush3.bf16.msra.mxu0 %v2693_v55  ;;  %2014 = vmatprep.mubr.msk.f32.mxu0 %vm2501_vm7, %v2502_v48  ;;  %v2357_v15 = vpack.c.bf16 %v1650_v14, %v1649_v13  ;;  %v2361_v19 = vpack.c.bf16 %v1652_v17, %v1651_v16  ;;  %v945_v17 = vld [vmem:[%s3196_s2 + $0x30] sm:$0xff] }
 0x11f   :  { %2312 = vmatprep.subr.bf16.mxu0 %v2500_v57 }
 0x122   :  { %2314 = vmatpush3.bf16.msra.mxu0 %v2718_v1 }
 0x123   :  { %2315 = vmatprep.subr.bf16.mxu0 %v2500_v57 }
 0x126   :  { %2317 = vmatpush3.bf16.msra.mxu0 %v2748_v8 }
 0x127   :  { %2318 = vmatprep.subr.bf16.mxu0 %v2500_v57 }
 0x12a   :  { %2320 = vmatpush3.bf16.msra.mxu0 %v2799_v34 }
 0x12b   :  { %2321 = vmatprep.subr.bf16.mxu0 %v2500_v57 }
 0x12e   :  { %2323 = vmatpush3.bf16.msra.mxu0 %v2809_v37 }
 0x12f   :  { %2324 = vmatprep.subr.bf16.mxu0 %v2500_v57 }
 0x132   :  { %2326 = vmatpush3.bf16.msra.mxu0 %v2819_v41 }
 0x133   :  { %2327 = vmatprep.subr.bf16.mxu0 %v2500_v57 }
 0x136   :  { %2329 = vmatpush3.bf16.msra.mxu0 %v2829_v44 }
 0x137   :  { %2330 = vmatprep.subr.bf16.mxu0 %v2500_v57 }
 0x13a   :  { %2332 = vmatpush3.bf16.msra.mxu0 %v2839_v47 }
 0x13b   :  { %2017 = vmatprep.subr.mxu0 %v2502_v48 }
 0x13d   :  { %2015 = vmatmul.mubr.f32.vlgmr.msra.gmra.mrb[6].mxu0 %v578_v20  ;;  %v939_v20 = vld [vmem:[%s3196_s2] sm:$0xff] }
 0x13e   :  { %2019 = vmatprep.mubr.msk.f32.mxu0 %vm2501_vm7, %v2502_v48  ;;  %2018 = vmatpush3.msra.mxu0 %v2899_v22  ;;  %v2365_v24 = vpack.c.bf16 %v940_v23, %v939_v20 }
 0x13f   :  { %2429 = vmatprep.subr.bf16.mxu0 %v2500_v57 }
 0x1f0   :  { %v661_v27 = vpop.f32.mrb[4].mxu0 }
 0x1f1   :  { %v1981_v28 = vpop.f32.mrb[5].mxu0  ;;  %v736_v29 = vmul.f32 0.001953125, %v661_v27 }
 0x1f3   :  { %v738_v31 = vmul.f32 %v736_v29, %v736_v29 }
 0x210   :  { %v731_v21 = vpop.f32.mrb[6].mxu0 }
 0x211   :  { %v737_v32 = vmul.f32 0.001953125, %v731_v21  ;;  %v2016_v33 = vpop.f32.mrb[7].mxu0 }
 0x213   :  { %v739_v35 = vsub.f32 %v737_v32, %v738_v31 }
 0x215   :  { %v741_v36 = vadd.f32 1e-05, %v739_v35 }
 0x217   :  { %2496 = vrsqrt.f32 %v741_v36 }
 0x221   :  { %v2497_v40 = vpop.eup %2496 }
 0x222   :  { %v743_v42 = vmul.f32 %v2497_v40, %v740_v39 }
 0x224   :  { %v745_v54 = vmul.f32 %v743_v42, %v736_v29  ;;  %2020 = vmatmul.mubr.msk.f32.vlgmr.msra.gmra.mrb[8].mxu0 %vm748_vm8, %v743_v42 }
 0x225   :  { %2431 = vmatpush3.bf16.msra.mxu0 %v2693_v55  ;;  %2173 = vmatprep.mubr.msk.f32.mxu0 %vm2501_vm7, %v2502_v48 }
 0x226   :  { %v746_v58 = vsub.f32 %v744_v43, %v745_v54  ;;  %2432 = vmatprep.subr.bf16.mxu0 %v2500_v57 }
 0x228   :  { %2025 = vmatmul.mubr.msk.f32.vlgmr.msra.gmra.mrb[4].mxu1 %vm748_vm8, %v746_v58 }
 0x229   :  { %2336 = vmatpush3.bf16.msra.mxu1 %v2333_v26  ;;  %2434 = vmatpush3.bf16.msra.mxu0 %v2718_v1  ;;  %v2985_v26 = vsub.s32 0, %v2603_v18 }
 0x22a   :  { %2338 = vmatprep.subr.bf16.mxu1 %v2337_v59  ;;  %2435 = vmatprep.subr.bf16.mxu0 %v2500_v57 }
 0x22d   :  { %2340 = vmatpush3.bf16.msra.mxu1 %v2337_v59  ;;  %2437 = vmatpush3.bf16.msra.mxu0 %v2748_v8  ;;  %v943_v59 = vld [vmem:[%s3196_s2 + $0x20] sm:$0xff] }
 0x22e   :  { %2342 = vmatprep.subr.bf16.mxu1 %v2341_v2  ;;  %2438 = vmatprep.subr.bf16.mxu0 %v2500_v57  ;;  %v2373_v11 = vpack.c.bf16 %v944_v60, %v943_v59  ;;  %v1664_v60 = vld [vmem:[%s3196_s2 + $0x148] sm:$0xff] }
 0x231   :  { %2344 = vmatpush3.bf16.msra.mxu1 %v2341_v2  ;;  %2440 = vmatpush3.bf16.msra.mxu0 %v2799_v34 }
 0x232   :  { %2346 = vmatprep.subr.bf16.mxu1 %v2345_v5  ;;  %2441 = vmatprep.subr.bf16.mxu0 %v2500_v57 }
 0x235   :  { %2348 = vmatpush3.bf16.msra.mxu1 %v2345_v5  ;;  %2443 = vmatpush3.bf16.msra.mxu0 %v2809_v37 }
 0x236   :  { %2350 = vmatprep.subr.bf16.mxu1 %v2349_v9  ;;  %2444 = vmatprep.subr.bf16.mxu0 %v2500_v57 }
 0x239   :  { %2352 = vmatpush3.bf16.msra.mxu1 %v2349_v9  ;;  %2446 = vmatpush3.bf16.msra.mxu0 %v2819_v41 }
 0x23a   :  { %2354 = vmatprep.subr.bf16.mxu1 %v2353_v12  ;;  %2447 = vmatprep.subr.bf16.mxu0 %v2500_v57 }
 0x23d   :  { %2356 = vmatpush3.bf16.msra.mxu1 %v2353_v12  ;;  %2449 = vmatpush3.bf16.msra.mxu0 %v2829_v44 }
 0x23e   :  { %2450 = vmatprep.subr.bf16.mxu0 %v2500_v57  ;;  %2358 = vmatprep.subr.bf16.mxu1 %v2357_v15 }
 0x241   :  { %2452 = vmatpush3.bf16.msra.mxu0 %v2839_v47  ;;  %2360 = vmatpush3.bf16.msra.mxu1 %v2357_v15 }
 0x242   :  { %2453 = vmatprep.subr.bf16.mxu0 %v2500_v57  ;;  %2362 = vmatprep.subr.bf16.mxu1 %v2361_v19 }
 0x245   :  { %2364 = vmatpush3.bf16.msra.mxu1 %v2361_v19  ;;  %v946_v19 = vld [vmem:[%s3196_s2 + $0x38] sm:$0xff] }
 0x246   :  { %2366 = vmatprep.subr.bf16.mxu1 %v2365_v24 }
 0x2f7   :  { %v818_v27 = vpop.f32.mrb[8].mxu0 }
 0x2f8   :  { %v898_v28 = vrot.slane %v818_v27, %v2985_v26  ;;  %v2021_v29 = vpop.f32.mrb[9].mxu0  ;;  %v947_v27 = vld [vmem:[%s3196_s2 + $0x40] sm:$0xff] }
 0x2f9   :  { %v949_v29 = vld [vmem:[%s3196_s2 + $0x50] sm:$0xff] }
 0x2fa   :  { %v900_v21 = vmul.f32 %v2856_v53, %v898_v28  ;;  %v899_v31 = vmul.f32 %v898_v28, %v2860_v56  ;;  %v901_v32 = vmul.f32 %v898_v28, %v2868_v62  ;;  %v902_v33 = vmul.f32 %v2866_v61, %v898_v28  ;;  %v942_v53 = vld [vmem:[%s3196_s2 + $0x18] sm:$0xff]  ;;  %v948_v28 = vld [vmem:[%s3196_s2 + $0x48] sm:$0xff] }
 0x2fb   :  { %v891_v35 = vpop.f32.mrb[4].mxu1  ;;  %v2369_v58 = vpack.c.bf16 %v942_v53, %v941_v45  ;;  %v2381_v18 = vpack.c.bf16 %v948_v28, %v947_v27  ;;  %v1657_v45 = vld [vmem:[%s3196_s2 + $0x110] sm:$0xff]  ;;  %v1658_v53 = vld [vmem:[%s3196_s2 + $0x118] sm:$0xff] }
 0x2fc   :  { %v906_v36 = vrot.slane %v891_v35, %v2985_v26  ;;  %v2026_v39 = vpop.f32.mrb[5].mxu1  ;;  %v953_v35 = vld [vmem:[%s3196_s2 + $0x70] sm:$0xff] }
 0x2fe   :  { %v907_v40 = vadd.f32 %v906_v36, %v899_v31  ;;  %v908_v42 = vadd.f32 %v906_v36, %v900_v21  ;;  %v909_v43 = vadd.f32 %v906_v36, %v901_v32  ;;  %v910_v56 = vadd.f32 %v906_v36, %v902_v33  ;;  %v951_v31 = vld [vmem:[%s3196_s2 + $0x60] sm:$0xff]  ;;  %v952_v32 = vld [vmem:[%s3196_s2 + $0x68] sm:$0xff]  ;;  %v954_v36 = vld [vmem:[%s3196_s2 + $0x78] sm:$0xff] }
 0x2ff   :  { %v2385_v21 = vpack.c.bf16 %v950_v38, %v949_v29  ;;  %v2389_v33 = vpack.c.bf16 %v952_v32, %v951_v31  ;;  %v2393_v39 = vpack.c.bf16 %v954_v36, %v953_v35 }
 0x300   :  { %v911_v46 = vmax.f32 %v907_v40, 0.0  ;;  %v912_v62 = vmax.f32 %v908_v42, 0.0  ;;  %v913_v54 = vmax.f32 %v909_v43, 0.0  ;;  %v914_v61 = vmax.f32 %v910_v56, 0.0  ;;  %v1655_v40 = vld [vmem:[%s3196_s2 + $0x100] sm:$0xff]  ;;  %v1656_v42 = vld [vmem:[%s3196_s2 + $0x108] sm:$0xff] }
 0x301   :  { %v2397_v43 = vpack.c.bf16 %v1656_v42, %v1655_v40  ;;  %v2401_v56 = vpack.c.bf16 %v1658_v53, %v1657_v45 }
 0x302   :  { %2059 = vmatprep.mubr.f32.mxu1 %v911_v46  ;;  %v929_v0 = vrot.slane %v913_v54, 1  ;;  %v915_v2 = vrot.slane %v911_v46, 7  ;;  %v918_v3 = vrot.slane %v914_v61, 7  ;;  %v916_v4 = vrot.slane %v912_v62, 7 }
 0x303   :  { %2060 = vmatmul.mubr.f32.vlgmr.msra.gmra.mrb[6].mxu1 %v912_v62  ;;  %v917_v5 = vrot.slane %v913_v54, 7  ;;  %v927_v6 = vrot.slane %v911_v46, 1  ;;  %v928_v7 = vrot.slane %v912_v62, 1  ;;  %v930_v9 = vrot.slane %v914_v61, 1  ;;  %v1659_v46 = vld [vmem:[%s3196_s2 + $0x120] sm:$0xff]  ;;  %v1660_v62 = vld [vmem:[%s3196_s2 + $0x128] sm:$0xff] }
 0x304   :  { %2368 = vmatpush3.bf16.msra.mxu1 %v2365_v24  ;;  %2062 = vmatprep.mubr.f32.mxu1 %v913_v54  ;;  %v922_v10 = vsel %vm206_vm1, %v918_v3, %v915_v2  ;;  %v921_v12 = vsel %vm206_vm1, %v915_v2, %v916_v4  ;;  %v2377_v24 = vpack.c.bf16 %v946_v19, %v945_v17  ;;  %v1665_v2 = vld [vmem:[%s3196_s2 + $0x150] sm:$0xff] }
 0x305   :  { %2370 = vmatprep.subr.bf16.mxu1 %v2369_v58  ;;  %v920_v13 = vsel %vm206_vm1, %v916_v4, %v917_v5  ;;  %v919_v14 = vsel %vm206_vm1, %v917_v5, %v918_v3  ;;  %v933_v15 = vsel %vm231_vm4, %v927_v6, %v928_v7  ;;  %v3017_v16 = vsel %vm231_vm4, %v928_v7, %v929_v0  ;;  %v1666_v3 = vld [vmem:[%s3196_s2 + $0x158] sm:$0xff]  ;;  %v1667_v5 = vld [vmem:[%s3196_s2 + $0x160] sm:$0xff] }
 0x306   :  { %v3027_v20 = vsel %vm231_vm4, %v929_v0, %v930_v9  ;;  %v3031_v23 = vsel %vm231_vm4, %v930_v9, %v927_v6  ;;  %v2405_v54 = vpack.c.bf16 %v1660_v62, %v1659_v46  ;;  %v2413_v0 = vpack.c.bf16 %v1664_v60, %v1663_v63  ;;  %v1668_v6 = vld [vmem:[%s3196_s2 + $0x168] sm:$0xff]  ;;  %v1669_v9 = vld [vmem:[%s3196_s2 + $0x170] sm:$0xff] }
 0x307   :  { %2063 = vmatmul.mubr.f32.gmra.mrb[8].mxu1 %v914_v61  ;;  %v1661_v61 = vld [vmem:[%s3196_s2 + $0x130] sm:$0xff]  ;;  %v2417_v4 = vpack.c.bf16 %v1666_v3, %v1665_v2  ;;  %v2421_v7 = vpack.c.bf16 %v1668_v6, %v1667_v5 }
 0x308   :  { %2372 = vmatpush3.bf16.msra.mxu1 %v2369_v58  ;;  %2097 = vmatprep.mubr.msk.f32.mxu1 %vm2648_vm2, %v922_v10  ;;  %v1662_v58 = vld [vmem:[%s3196_s2 + $0x138] sm:$0xff] }
 0x309   :  { %2374 = vmatprep.subr.bf16.mxu1 %v2373_v11  ;;  %v2409_v59 = vpack.c.bf16 %v1662_v58, %v1661_v61  ;;  %v1670_v10 = vld [vmem:[%s3196_s2 + $0x178] sm:$0xff] }
 0x30c   :  { %2376 = vmatpush3.bf16.msra.mxu1 %v2373_v11  ;;  %v2425_v11 = vpack.c.bf16 %v1670_v10, %v1669_v9 }
 0x30d   :  { %2378 = vmatprep.subr.bf16.mxu1 %v2377_v24 }
 0x310   :  { %2380 = vmatpush3.bf16.msra.mxu1 %v2377_v24 }
 0x311   :  { %2382 = vmatprep.subr.bf16.mxu1 %v2381_v18 }
 0x314   :  { %2384 = vmatpush3.bf16.msra.mxu1 %v2381_v18 }
 0x315   :  { %2386 = vmatprep.subr.bf16.mxu1 %v2385_v21 }
 0x318   :  { %2388 = vmatpush3.bf16.msra.mxu1 %v2385_v21 }
 0x319   :  { %2390 = vmatprep.subr.bf16.mxu1 %v2389_v33 }
 0x31c   :  { %2392 = vmatpush3.bf16.msra.mxu1 %v2389_v33 }
 0x31d   :  { %2394 = vmatprep.subr.bf16.mxu1 %v2393_v39 }
 0x320   :  { %2396 = vmatpush3.bf16.msra.mxu1 %v2393_v39 }
 0x321   :  { %2398 = vmatprep.subr.bf16.mxu1 %v2397_v43 }
 0x323   :  { %2098 = vmatmul.mubr.f32.vlgmr.msra.gmra.mrb[6].mxu1 %v921_v12 }
 0x324   :  { %2100 = vmatprep.mubr.msk.f32.mxu1 %vm2709_vm3, %v920_v13  ;;  %2400 = vmatpush3.bf16.msra.mxu1 %v2397_v43  ;;  %v1414_v43 = vld [vmem:[%s3199_s8] sm:$0x1] }
 0x325   :  { %2402 = vmatprep.subr.bf16.mxu1 %v2401_v56 }
 0x327   :  { %2101 = vmatmul.mubr.f32.gmra.mrb[8].mxu1 %v919_v14 }
 0x328   :  { %2404 = vmatpush3.bf16.msra.mxu1 %v2401_v56  ;;  %2135 = vmatprep.mubr.f32.mxu1 %v933_v15  ;;  %v1418_v56 = vld [vmem:[%s3200_s9] sm:$0x1] }
 0x329   :  { %2406 = vmatprep.subr.bf16.mxu1 %v2405_v54 }
 0x32c   :  { %2408 = vmatpush3.bf16.msra.mxu1 %v2405_v54 }
 0x32d   :  { %2410 = vmatprep.subr.bf16.mxu1 %v2409_v59 }
 0x330   :  { %2412 = vmatpush3.bf16.msra.mxu1 %v2409_v59 }
 0x331   :  { %2414 = vmatprep.subr.bf16.mxu1 %v2413_v0 }
 0x334   :  { %2416 = vmatpush3.bf16.msra.mxu1 %v2413_v0 }
 0x335   :  { %2418 = vmatprep.subr.bf16.mxu1 %v2417_v4 }
 0x338   :  { %2420 = vmatpush3.bf16.msra.mxu1 %v2417_v4 }
 0x339   :  { %2422 = vmatprep.subr.bf16.mxu1 %v2421_v7 }
 0x33c   :  { %2424 = vmatpush3.bf16.msra.mxu1 %v2421_v7 }
 0x33d   :  { %2426 = vmatprep.subr.bf16.mxu1 %v2425_v11 }
 0x340   :  { %2428 = vmatpush3.bf16.msra.mxu1 %v2425_v11 }
 0x343   :  { %2136 = vmatmul.mubr.msk.f32.vlgmr.msra.gmra.mrb[6].mxu1 %vm2772_vm5, %v3017_v16 }
 0x344   :  { %2138 = vmatprep.mubr.f32.mxu1 %v3027_v20 }
 0x347   :  { %2139 = vmatmul.mubr.msk.f32.gmra.mrb[8].mxu1 %vm2782_vm6, %v3031_v23 }
 0x416   :  { %v3116_v12 = vpop.f32.mrb[6].mxu1 }
 0x417   :  { %v1258_v13 = vmul.f32 %v3116_v12, %v3116_v12  ;;  %v3120_v14 = vpop.f32.mrb[7].mxu1 }
 0x418   :  { %v1248_v15 = vadd.f32 %v3116_v12, %v3120_v14  ;;  %v1257_v25 = vmul.f32 %v3120_v14, %v3120_v14 }
 0x41a   :  { %v1261_v16 = vadd.f32 %v1258_v13, %v1257_v25  ;;  %v3126_v17 = vpop.f32.mrb[8].mxu1 }
 0x41b   :  { %v3128_v19 = vpop.f32.mrb[9].mxu1  ;;  %v1260_v23 = vmul.f32 %v3126_v17, %v3126_v17 }
 0x41c   :  { %v1249_v30 = vadd.f32 %v1248_v15, %v3128_v19  ;;  %v1259_v20 = vmul.f32 %v3128_v19, %v3128_v19 }
 0x41e   :  { %v1250_v24 = vadd.f32 %v3126_v17, %v1249_v30  ;;  %v1262_v27 = vadd.f32 %v1261_v16, %v1259_v20 }
 0x420   :  { %v1251_v28 = vrot.slane %v1250_v24, 4  ;;  %v1263_v18 = vadd.f32 %v1262_v27, %v1260_v23 }
 0x422   :  { %v1252_v29 = vadd.f32 %v1251_v28, %v1250_v24  ;;  %v1264_v33 = vrot.slane %v1263_v18, 4 }
 0x424   :  { %v1253_v38 = vrot.slane %v1252_v29, 2  ;;  %v1265_v35 = vadd.f32 %v1264_v33, %v1263_v18 }
 0x426   :  { %v1254_v21 = vadd.f32 %v1253_v38, %v1252_v29 }
 0x428   :  { %v1255_v31 = vrot.slane %v1254_v21, 1 }
 0x42a   :  { %v1256_v32 = vadd.f32 %v1255_v31, %v1254_v21 }
 0x42c   :  { %2174 = vmatmul.mubr.f32.vlgmr.msra.gmra.mrb[10].mxu0 %v1256_v32 }
 0x42d   :  { %2455 = vmatpush3.bf16.msra.mxu0 %v2693_v55  ;;  %2208 = vmatprep.mubr.msk.f32.mxu0 %vm2501_vm7, %v2502_v48  ;;  %v1266_v55 = vrot.slane %v1265_v35, 2 }
 0x42e   :  { %2456 = vmatprep.subr.bf16.mxu0 %v2500_v57 }
 0x431   :  { %2458 = vmatpush3.bf16.msra.mxu0 %v2718_v1  ;;  %v1267_v1 = vadd.f32 %v1266_v55, %v1265_v35 }
 0x432   :  { %2459 = vmatprep.subr.bf16.mxu0 %v2500_v57 }
 0x435   :  { %2461 = vmatpush3.bf16.msra.mxu0 %v2748_v8  ;;  %v1268_v8 = vrot.slane %v1267_v1, 1 }
 0x436   :  { %2462 = vmatprep.subr.bf16.mxu0 %v2500_v57 }
 0x439   :  { %2464 = vmatpush3.bf16.msra.mxu0 %v2799_v34  ;;  %v1269_v34 = vadd.f32 %v1268_v8, %v1267_v1 }
 0x43a   :  { %2465 = vmatprep.subr.bf16.mxu0 %v2500_v57 }
 0x43d   :  { %2467 = vmatpush3.bf16.msra.mxu0 %v2809_v37 }
 0x43e   :  { %2468 = vmatprep.subr.bf16.mxu0 %v2500_v57 }
 0x441   :  { %2470 = vmatpush3.bf16.msra.mxu0 %v2819_v41 }
 0x442   :  { %2471 = vmatprep.subr.bf16.mxu0 %v2500_v57 }
 0x445   :  { %2473 = vmatpush3.bf16.msra.mxu0 %v2829_v44 }
 0x446   :  { %2474 = vmatprep.subr.bf16.mxu0 %v2500_v57 }
 0x449   :  { %2476 = vmatpush3.bf16.msra.mxu0 %v2839_v47 }
 0x44a   :  { %2211 = vmatprep.subr.mxu0 %v2502_v48 }
 0x44c   :  { %2209 = vmatmul.mubr.f32.vlgmr.msra.gmra.mrb[12].mxu0 %v1269_v34 }
 0x44d   :  { %2212 = vmatpush3.msra.mxu0 %v2899_v22  ;;  %2213 = vmatprep.mubr.msk.f32.mxu0 %vm2501_vm7, %v2502_v48 }
 0x44e   :  { %2216 = vmatprep.subr.mxu0 %v2502_v48 }
 0x4ff   :  { %v1336_v37 = vpop.f32.mrb[10].mxu0 }
 0x500   :  { %v2175_v41 = vpop.f32.mrb[11].mxu0  ;;  %v1410_v36 = vmul.f32 0.001953125, %v1336_v37 }
 0x502   :  { %v1412_v39 = vmul.f32 %v1410_v36, %v1410_v36 }
 0x51f   :  { %v1406_v44 = vpop.f32.mrb[12].mxu0 }
 0x520   :  { %v1411_v57 = vmul.f32 0.001953125, %v1406_v44  ;;  %v2210_v40 = vpop.f32.mrb[13].mxu0 }
 0x522   :  { %v1413_v42 = vsub.f32 %v1411_v57, %v1412_v39 }
 0x524   :  { %v1415_v47 = vadd.f32 1e-05, %v1413_v42 }
 0x526   :  { %2498 = vrsqrt.f32 %v1415_v47 }
 0x530   :  { %v2499_v45 = vpop.eup %2498 }
 0x531   :  { %v1417_v53 = vmul.f32 %v2499_v45, %v1414_v43 }
 0x533   :  { %2214 = vmatmul.mubr.msk.f32.vlgmr.msra.gmra.mrb[14].mxu0 %vm748_vm8, %v1417_v53  ;;  %v1419_v46 = vmul.f32 %v1417_v53, %v1410_v36 }
 0x534   :  { %2217 = vmatpush3.msra.mxu0 %v2899_v22  ;;  %2218 = vmatprep.mubr.msk.f32.mxu0 %vm2501_vm7, %v2502_v48 }
 0x535   :  { %v1420_v62 = vsub.f32 %v1418_v56, %v1419_v46 }
 0x537   :  { %2219 = vmatmul.mubr.msk.f32.vlgmr.msra.gmra.mrb[16].mxu0 %vm748_vm8, %v1420_v62 }
 0x606   :  { %v1490_v54 = vpop.f32.mrb[14].mxu0 }
 0x607   :  { %v1570_v61 = vrot.slane %v1490_v54, %v2985_v26  ;;  %v2215_v58 = vpop.f32.mrb[15].mxu0 }
 0x609   :  { %v1571_v59 = vmul.f32 %v1570_v61, %v3120_v14  ;;  %v1572_v63 = vmul.f32 %v3116_v12, %v1570_v61  ;;  %v1573_v60 = vmul.f32 %v1570_v61, %v3128_v19  ;;  %v1574_v0 = vmul.f32 %v3126_v17, %v1570_v61 }
 0x60a   :  { %v1563_v2 = vpop.f32.mrb[16].mxu0 }
 0x60b   :  { %v1578_v22 = vrot.slane %v1563_v2, %v2985_v26  ;;  %v2220_v3 = vpop.f32.mrb[17].mxu0 }
 0x60d   :  { %v1579_v48 = vadd.f32 %v1578_v22, %v1571_v59  ;;  %v1580_v4 = vadd.f32 %v1578_v22, %v1572_v63  ;;  %v1581_v5 = vadd.f32 %v1578_v22, %v1573_v60  ;;  %v1582_v6 = vadd.f32 %v1578_v22, %v1574_v0 }
 0x60f   :  { %v1583_v7 = vmax.f32 %v1579_v48, 0.0  ;;  %v1584_v9 = vmax.f32 %v1580_v4, 0.0  ;;  %v1585_v10 = vmax.f32 %v1581_v5, 0.0  ;;  %v1586_v11 = vmax.f32 %v1582_v6, 0.0 }
 0x611   :  { %v1587_v13 = vadd.f32 %v1583_v7, %v2850_v50  ;;  %v1588_v12 = vadd.f32 %v2848_v49, %v1584_v9  ;;  %v1589_v14 = vadd.f32 %v1585_v10, %v2854_v52  ;;  %v1590_v15 = vadd.f32 %v2852_v51, %v1586_v11 }
 0x613   :  { %v1591_v25 = vmax.f32 %v1587_v13, 0.0  ;;  %v1592_v16 = vmax.f32 %v1588_v12, 0.0  ;;  %v1593_v26 = vmax.f32 %v1589_v14, 0.0  ;;  %v1594_v17 = vmax.f32 %v1590_v15, 0.0 }
 0x615   :  { %1595 = vst [vmem:[%s3201_s10] sm:$0xff] %v1591_v25  ;;  %1596 = vst [vmem:[%s3201_s10 + $0x8] sm:$0xff] %v1592_v16 }
 0x616   :  { %1597 = vst [vmem:[%s3201_s10 + $0x10] sm:$0xff] %v1593_v26  ;;  %1598 = vst [vmem:[%s3201_s10 + $0x18] sm:$0xff] %v1594_v17 }

</bundles_post_ra>
